<compile_context>
chip_gen: v7x
topology: tpu7x:2x2x1
jax: 0.10.0
libtpu: 0.0.40
codegen_flags: <defaults>
</compile_context>

<pallas_src>
import functools
import math

import jax
import jax.numpy as jnp
from jax.experimental import pallas as pl
from jax.experimental.pallas import tpu as pltpu


# ----------------------------------------------------------------------------
# Shape helpers
# ----------------------------------------------------------------------------
def _ffn_dims(in_feats, hidden, out_feats, n_layers):
    """(d_in, d_out) for each Linear layer of one FeedForwardNet."""
    if n_layers == 1:
        return [(in_feats, out_feats)]
    return ([(in_feats, hidden)]
            + [(hidden, hidden)] * (n_layers - 2)
            + [(hidden, out_feats)])


def _fused_layer_dims(in_feats, hidden, out_pad, num_hops, n_layers):
    """(d_in, d_out) of each fused matmul (block-diag inception + projection)."""
    H = num_hops
    if n_layers == 1:
        return [(H * in_feats, H * hidden), (H * hidden, out_pad)]
    incep = [(H * in_feats, H * hidden)] + [(H * hidden, H * hidden)] * (n_layers - 1)
    proj = ([(H * hidden, hidden)] + [(hidden, hidden)] * (n_layers - 2)
            + [(hidden, out_pad)])
    return incep + proj


def _vmem_limit_bytes():
    """Per-generation scoped-VMEM limit (v5e/v6e: 128 MiB phys, v7x: 64 MiB)."""
    phys = 64 * 1024 * 1024                       # conservative fallback (v7x)
    try:
        phys = int(pltpu.get_tpu_info().vmem_capacity_bytes)
    except Exception:
        pass
    return int(min((phys * 3) // 4, 96 * 1024 * 1024))


def _choose_tile_m(M, in_feats, hidden, out_pad, num_hops, n_layers,
                   vmem_budget_bytes):
    """Largest row tile fitting the VMEM budget; keep >=2 grid steps when possible."""
    dims = _fused_layer_dims(in_feats, hidden, out_pad, num_hops, n_layers)
    # bf16 weights + f32 biases, single-buffered (constant index_map).
    fixed = sum(2 * di * do + 4 * do for di, do in dims) + 4 * num_hops * hidden
    h_in, h_hid = num_hops * in_feats, num_hops * hidden
    max_w = max(h_in, h_hid, hidden, out_pad)
    per_row = (2 * 2 * h_in            # bf16 packed-feat tile, double-buffered
               + 2 * 4 * out_pad       # f32 output tile, double-buffered
               + 6 * 4 * max_w)        # live activation temporaries (generous)
    candidates = (8192, 4096, 2048, 1024, 512, 256, 128, 64, 32, 16, 8)
    fitting = [c for c in candidates if fixed + c * per_row <= vmem_budget_bytes]
    tile = fitting[0] if fitting else 8
    if M > 256:
        # Keep >=2 grid steps so both v7x TensorCores get work on the parallel axis.
        smaller = [c for c in fitting if c < M]
        if smaller:
            tile = min(tile, smaller[0])
    return max(8, min(tile, M))


def _block_diag(mats):
    rows = sum(m.shape[0] for m in mats)
    cols = sum(m.shape[1] for m in mats)
    out = jnp.zeros((rows, cols), mats[0].dtype)
    r = c = 0
    for m in mats:
        out = out.at[r:r + m.shape[0], c:c + m.shape[1]].set(m)
        r += m.shape[0]
        c += m.shape[1]
    return out


# ----------------------------------------------------------------------------
# Fused Pallas kernel: entire SIGN forward for one tile of nodes
# ----------------------------------------------------------------------------
def _sign_fused_kernel(alphas_ref, hop_alpha_ref, x_ref, *refs, n_layers):
    """alphas_ref (SMEM f32[2]): [a_project, a_sign].
    hop_alpha_ref (VMEM f32[1, H*hidden]): per-hop FFN PReLU alphas, broadcast
      over each hop's hidden block.
    x_ref: packed bf16 feats tile (tile_m, H*in_feats).
    refs = n_layers block-diag inception (W, b) pairs,
           n_layers projection (W, b) pairs (last one zero-padded to out_pad),
           out_ref.
    """
    layers = []
    pos = 0
    for _ in range(2 * n_layers):
        layers.append((refs[pos], refs[pos + 1]))
        pos += 2
    out_ref = refs[pos]
    incep, proj = layers[:n_layers], layers[n_layers:]

    def prelu(v, a):
        return jnp.where(v > 0.0, v, a * v)

    a_project = alphas_ref[0]
    a_sign = alphas_ref[1]
    hop_alpha = hop_alpha_ref[...]              # (1, H*hidden) f32

    # Inception FFNs: block-diagonal weights == per-hop FFNs + concat, fused.
    x = x_ref[...]                              # bf16; input_drop = identity (eval)
    for l, (w_ref, b_ref) in enumerate(incep):
        y = jnp.dot(x, w_ref[...], preferred_element_type=jnp.float32) + b_ref[...]
        if l < n_layers - 1:
            x = prelu(y, hop_alpha).astype(jnp.bfloat16)   # FFN PReLU; dropout=identity
        else:
            x = y                                          # f32 for the SIGN PReLU

    # SIGN-level PReLU on the concatenated hop outputs (dropout = identity).
    x = prelu(x, a_sign).astype(jnp.bfloat16)

    # Projection FFN.
    for l, (w_ref, b_ref) in enumerate(proj):
        y = jnp.dot(x, w_ref[...], preferred_element_type=jnp.float32) + b_ref[...]
        if l < n_layers - 1:
            x = prelu(y, a_project).astype(jnp.bfloat16)
        else:
            x = y

    out_ref[...] = x.astype(out_ref.dtype)      # lane-dense (tile_m, out_pad) store


# ----------------------------------------------------------------------------
# Wrapper: pack feats, fold weights, tile M, launch one fused pallas_call
# ----------------------------------------------------------------------------
def sign_forward(params, feats, *, tile_m=None):
    num_hops = len(params["inception"])
    n_layers = params["n_layers"]
    hidden = params["hidden"]
    out_feats = params["out_feats"]
    M, in_feats = feats[0].shape
    for f in feats:
        assert f.shape == (M, in_feats)

    out_pad = max(128, -(-out_feats // 128) * 128)     # lane-dense output width
    h_in = num_hops * in_feats

    vmem_limit = _vmem_limit_bytes()
    if tile_m is None:
        tile_m = _choose_tile_m(M, in_feats, hidden, out_pad, num_hops, n_layers,
                                vmem_budget_bytes=vmem_limit - 4 * 1024 * 1024)
    tile_m = max(1, min(tile_m, M))
    grid = (pl.cdiv(M, tile_m),)

    # --- fused operands ------------------------------------------------------
    # One packed bf16 feature stream (single DMA per grid step).
    x_packed = jnp.concatenate(feats, axis=-1).astype(jnp.bfloat16)       # (M, H*in)
    alphas_smem = jnp.stack([params["project"]["prelu"],
                             params["prelu"]]).astype(jnp.float32)        # [a_proj, a_sign]
    hop_alpha = jnp.repeat(
        jnp.stack([ffn["prelu"] for ffn in params["inception"]]).astype(jnp.float32),
        hidden).reshape(1, num_hops * hidden)

    fused_layers = []   # (W bf16, b f32[1, w]) in kernel order
    for l in range(n_layers):                            # block-diag inception layers
        w = _block_diag([ffn["layers"][l][0] for ffn in params["inception"]])
        b = jnp.concatenate([ffn["layers"][l][1] for ffn in params["inception"]])
        fused_layers.append((w.astype(jnp.bfloat16),
                             b.astype(jnp.float32).reshape(1, -1)))
    for l, (w, b) in enumerate(params["project"]["layers"]):
        if l == n_layers - 1 and out_pad != out_feats:   # zero-pad for lane-dense store
            w = jnp.pad(w, ((0, 0), (0, out_pad - out_feats)))
            b = jnp.pad(b, (0, out_pad - out_feats))
        fused_layers.append((w.astype(jnp.bfloat16),
                             b.astype(jnp.float32).reshape(1, -1)))

    # --- advisory cost estimate ----------------------------------------------
    dims = _fused_layer_dims(in_feats, hidden, out_pad, num_hops, n_layers)
    flops = 2 * M * sum(di * do for di, do in dims)
    bytes_accessed = (2 * M * h_in + 4 * M * out_pad
                      + sum(2 * di * do + 4 * do for di, do in dims)
                      + 4 * num_hops * hidden + 8)
    cost = pl.CostEstimate(flops=int(flops), transcendentals=0,
                           bytes_accessed=int(bytes_accessed))

    kernel = functools.partial(_sign_fused_kernel, n_layers=n_layers)

    def launch(single_buffer_weights):
        def const_spec(shape):
            idx = lambda i, _n=len(shape): (0,) * _n
            if single_buffer_weights:
                # Constant index_map -> never re-fetched; single-buffer to save
                # VMEM for bigger row tiles (matters on v7x's 64 MiB VMEM).
                return pl.BlockSpec(shape, idx, pipeline_mode=pl.Buffered(1))
            return pl.BlockSpec(shape, idx)

        operands = [alphas_smem, hop_alpha, x_packed]
        in_specs = [pl.BlockSpec(memory_space=pltpu.MemorySpace.SMEM),   # scalars -> SMEM
                    const_spec(hop_alpha.shape),
                    pl.BlockSpec((tile_m, h_in), lambda i: (i, 0))]
        for w, b in fused_layers:
            operands += [w, b]
            in_specs += [const_spec(w.shape), const_spec(b.shape)]

        return pl.pallas_call(
            kernel,
            out_shape=jax.ShapeDtypeStruct((M, out_pad), jnp.float32),
            grid_spec=pltpu.PrefetchScalarGridSpec(
                num_scalar_prefetch=0,
                grid=grid,
                in_specs=in_specs,
                out_specs=pl.BlockSpec((tile_m, out_pad), lambda i: (i, 0)),
            ),
            compiler_params=pltpu.CompilerParams(
                # Row tiles are independent -> shard across v7x's 2 TensorCores.
                dimension_semantics=("parallel",),
                vmem_limit_bytes=int(vmem_limit),
            ),
            cost_estimate=cost,
        )(*operands)

    try:
        out = launch(single_buffer_weights=True)
    except Exception:
        # Fallback if this JAX build rejects pipeline_mode=pl.Buffered(1).
        out = launch(single_buffer_weights=False)

    return out[:, :out_feats]


# ----------------------------------------------------------------------------
# Parameter construction (deterministic, mirrors reset_parameters)
# ----------------------------------------------------------------------------
def xavier_uniform(key, out_feats, in_feats, gain):
    bound = gain * math.sqrt(6.0 / (in_feats + out_feats))
    return jax.random.uniform(key, (out_feats, in_feats), jnp.float32,
                              minval=-bound, maxval=bound)


def make_ffn_params(key, in_feats, hidden, out_feats, n_layers):
    """Returns dict with list of (W[in,out], b[out]) plus PReLU alpha."""
    gain = math.sqrt(2.0)  # nn.init.calculate_gain('relu')
    dims = _ffn_dims(in_feats, hidden, out_feats, n_layers)
    layers = []
    keys = jax.random.split(key, len(dims))
    for k, (fi, fo) in zip(keys, dims):
        w = xavier_uniform(k, fo, fi, gain)               # torch layout [out, in]
        layers.append((jnp.transpose(w), jnp.zeros((fo,), jnp.float32)))
    return {"layers": layers, "prelu": jnp.float32(0.25), "n_layers": n_layers}


def make_sign_params(key, in_feats, hidden, out_feats, num_hops, n_layers):
    keys = jax.random.split(key, num_hops + 1)
    inception = [make_ffn_params(keys[h], in_feats, hidden, hidden, n_layers)
                 for h in range(num_hops)]
    project = make_ffn_params(keys[-1], num_hops * hidden, hidden, out_feats,
                              n_layers)
    return {"inception": inception, "project": project,
            "prelu": jnp.float32(0.25), "n_layers": n_layers,
            "hidden": hidden, "out_feats": out_feats}


# ----------------------------------------------------------------------------
# Pure-JAX references (correctness check)
# ----------------------------------------------------------------------------
def _maybe_bf16(x, bf16):
    return x.astype(jnp.bfloat16) if bf16 else x


def ffn_forward_ref(ffn, x, bf16=False):
    n_layers = ffn["n_layers"]
    for layer_id, (w, b) in enumerate(ffn["layers"]):
        x = jnp.dot(_maybe_bf16(x, bf16), _maybe_bf16(w, bf16),
                    preferred_element_type=jnp.float32) + b
        if layer_id < n_layers - 1:
            x = jnp.where(x > 0, x, ffn["prelu"] * x)
    return x


def sign_forward_ref(params, feats, bf16=False):
    hid = [ffn_forward_ref(p, f, bf16) for f, p in zip(feats, params["inception"])]
    cat = jnp.concatenate(hid, axis=-1)
    a = params["prelu"]
    act = jnp.where(cat > 0, cat, a * cat)
    return ffn_forward_ref(params["project"], act, bf16)


# ----------------------------------------------------------------------------
if __name__ == "__main__":
    # Small, module-consistent shapes. num_nodes is NOT a multiple of the
    # row tile so the cdiv / partial-final-block path is exercised.
    num_nodes = 400
    in_feats = 32
    hidden = 32
    out_feats = 16
    num_hops = 3
    n_layers = 2

    key = jax.random.PRNGKey(0)
    k_params, k_feats = jax.random.split(key)
    params = make_sign_params(k_params, in_feats, hidden, out_feats,
                              num_hops, n_layers)

    feat_keys = jax.random.split(k_feats, num_hops)
    feats = [jax.random.normal(fk, (num_nodes, in_feats), jnp.float32)
             for fk in feat_keys]

    # tile_m=128 -> 4 grid steps (last partial), exercising the pipelined path.
    out = sign_forward(params, feats, tile_m=128)
    out = jax.block_until_ready(out)

    assert out.shape == (num_nodes, out_feats)
    # Tight check vs a bf16-cast-matched reference (same rounding points).
    ref_bf16 = sign_forward_ref(params, feats, bf16=True)
    assert jnp.allclose(out, ref_bf16, atol=1e-2, rtol=1e-2), "mismatch vs bf16 reference"
    # Loose sanity check vs the pure-f32 reference.
    ref_f32 = sign_forward_ref(params, feats, bf16=False)
    assert jnp.allclose(out, ref_f32, atol=5e-2, rtol=5e-2), "mismatch vs f32 reference"

    print("KERNEL_OK")
</pallas_src>

<mosaic_0001>
module attributes {stable_mosaic.version = 11 : i64} {
  func.func @_sign_fused_kernel(%arg0: i32, %arg1: memref<2xf32, #tpu.memory_space<smem>>, %arg2: memref<1x96xf32, #tpu.memory_space<vmem>>, %arg3: memref<128x96xbf16, #tpu.memory_space<vmem>>, %arg4: memref<96x96xbf16, #tpu.memory_space<vmem>>, %arg5: memref<1x96xf32, #tpu.memory_space<vmem>>, %arg6: memref<96x96xbf16, #tpu.memory_space<vmem>>, %arg7: memref<1x96xf32, #tpu.memory_space<vmem>>, %arg8: memref<96x32xbf16, #tpu.memory_space<vmem>>, %arg9: memref<1x32xf32, #tpu.memory_space<vmem>>, %arg10: memref<32x128xbf16, #tpu.memory_space<vmem>>, %arg11: memref<1x128xf32, #tpu.memory_space<vmem>>, %arg12: memref<128x128xf32, #tpu.memory_space<vmem>>) attributes {dimension_semantics = [#tpu.dimension_semantics<parallel>], iteration_bounds = array<i64: 4>, scalar_prefetch = 0 : i64, scratch_operands = 0 : i64, tpu.core_type = #tpu.core_type<tc>, window_params = [{transform_indices = @transform_0, window_bounds = array<i64: 2>}, {pipeline_mode = #tpu.pipeline_mode<synchronous>, transform_indices = @transform_1, window_bounds = array<i64: 1, 96>}, {transform_indices = @transform_2, window_bounds = array<i64: 128, 96>}, {pipeline_mode = #tpu.pipeline_mode<synchronous>, transform_indices = @transform_3, window_bounds = array<i64: 96, 96>}, {pipeline_mode = #tpu.pipeline_mode<synchronous>, transform_indices = @transform_4, window_bounds = array<i64: 1, 96>}, {pipeline_mode = #tpu.pipeline_mode<synchronous>, transform_indices = @transform_5, window_bounds = array<i64: 96, 96>}, {pipeline_mode = #tpu.pipeline_mode<synchronous>, transform_indices = @transform_6, window_bounds = array<i64: 1, 96>}, {pipeline_mode = #tpu.pipeline_mode<synchronous>, transform_indices = @transform_7, window_bounds = array<i64: 96, 32>}, {pipeline_mode = #tpu.pipeline_mode<synchronous>, transform_indices = @transform_8, window_bounds = array<i64: 1, 32>}, {pipeline_mode = #tpu.pipeline_mode<synchronous>, transform_indices = @transform_9, window_bounds = array<i64: 32, 128>}, {pipeline_mode = #tpu.pipeline_mode<synchronous>, transform_indices = @transform_10, window_bounds = array<i64: 1, 128>}, {transform_indices = @transform_11, window_bounds = array<i64: 128, 128>}]} {
    %c0 = arith.constant 0 : index
    %0 = memref.load %arg1[%c0] : memref<2xf32, #tpu.memory_space<smem>>
    %c1 = arith.constant 1 : index
    %1 = memref.load %arg1[%c1] : memref<2xf32, #tpu.memory_space<smem>>
    %c0_0 = arith.constant 0 : index
    %c0_1 = arith.constant 0 : index
    %2 = vector.load %arg2[%c0_0, %c0_1] : memref<1x96xf32, #tpu.memory_space<vmem>>, vector<1x96xf32>
    %c0_2 = arith.constant 0 : index
    %c0_3 = arith.constant 0 : index
    %3 = vector.load %arg3[%c0_2, %c0_3] : memref<128x96xbf16, #tpu.memory_space<vmem>>, vector<128x96xbf16>
    %c0_4 = arith.constant 0 : index
    %c0_5 = arith.constant 0 : index
    %4 = vector.load %arg4[%c0_4, %c0_5] : memref<96x96xbf16, #tpu.memory_space<vmem>>, vector<96x96xbf16>
    %cst = arith.constant dense<0.000000e+00> : vector<128x96xf32>
    %5 = tpu.matmul %3, %4, %cst {dimension_numbers = #tpu.dot_dimension_numbers<[1], [0], [0], [1], [0, 0, 1, 1], [], []>} : vector<128x96xbf16>, vector<96x96xbf16>, vector<128x96xf32> -> vector<128x96xf32>
    %c0_6 = arith.constant 0 : index
    %c0_7 = arith.constant 0 : index
    %6 = vector.load %arg5[%c0_6, %c0_7] : memref<1x96xf32, #tpu.memory_space<vmem>>, vector<1x96xf32>
    %7 = vector.broadcast %6 : vector<1x96xf32> to vector<128x96xf32>
    %8 = arith.addf %5, %7 : vector<128x96xf32>
    %cst_8 = arith.constant 0.000000e+00 : f32
    %9 = vector.broadcast %cst_8 : f32 to vector<128x96xf32>
    %10 = arith.cmpf ogt, %8, %9 : vector<128x96xf32>
    %11 = vector.broadcast %2 : vector<1x96xf32> to vector<128x96xf32>
    %12 = arith.mulf %11, %8 : vector<128x96xf32>
    %13 = arith.select %10, %8, %12 : vector<128x96xi1>, vector<128x96xf32>
    %14 = arith.truncf %13 : vector<128x96xf32> to vector<128x96xbf16>
    %c0_9 = arith.constant 0 : index
    %c0_10 = arith.constant 0 : index
    %15 = vector.load %arg6[%c0_9, %c0_10] : memref<96x96xbf16, #tpu.memory_space<vmem>>, vector<96x96xbf16>
    %cst_11 = arith.constant dense<0.000000e+00> : vector<128x96xf32>
    %16 = tpu.matmul %14, %15, %cst_11 {dimension_numbers = #tpu.dot_dimension_numbers<[1], [0], [0], [1], [0, 0, 1, 1], [], []>} : vector<128x96xbf16>, vector<96x96xbf16>, vector<128x96xf32> -> vector<128x96xf32>
    %c0_12 = arith.constant 0 : index
    %c0_13 = arith.constant 0 : index
    %17 = vector.load %arg7[%c0_12, %c0_13] : memref<1x96xf32, #tpu.memory_space<vmem>>, vector<1x96xf32>
    %18 = vector.broadcast %17 : vector<1x96xf32> to vector<128x96xf32>
    %19 = arith.addf %16, %18 : vector<128x96xf32>
    %cst_14 = arith.constant 0.000000e+00 : f32
    %20 = vector.broadcast %cst_14 : f32 to vector<128x96xf32>
    %21 = arith.cmpf ogt, %19, %20 : vector<128x96xf32>
    %22 = vector.broadcast %1 : f32 to vector<128x96xf32>
    %23 = arith.mulf %22, %19 : vector<128x96xf32>
    %24 = arith.select %21, %19, %23 : vector<128x96xi1>, vector<128x96xf32>
    %25 = arith.truncf %24 : vector<128x96xf32> to vector<128x96xbf16>
    %c0_15 = arith.constant 0 : index
    %c0_16 = arith.constant 0 : index
    %26 = vector.load %arg8[%c0_15, %c0_16] : memref<96x32xbf16, #tpu.memory_space<vmem>>, vector<96x32xbf16>
    %cst_17 = arith.constant dense<0.000000e+00> : vector<128x32xf32>
    %27 = tpu.matmul %25, %26, %cst_17 {dimension_numbers = #tpu.dot_dimension_numbers<[1], [0], [0], [1], [0, 0, 1, 1], [], []>} : vector<128x96xbf16>, vector<96x32xbf16>, vector<128x32xf32> -> vector<128x32xf32>
    %c0_18 = arith.constant 0 : index
    %c0_19 = arith.constant 0 : index
    %28 = vector.load %arg9[%c0_18, %c0_19] : memref<1x32xf32, #tpu.memory_space<vmem>>, vector<1x32xf32>
    %29 = vector.broadcast %28 : vector<1x32xf32> to vector<128x32xf32>
    %30 = arith.addf %27, %29 : vector<128x32xf32>
    %cst_20 = arith.constant 0.000000e+00 : f32
    %31 = vector.broadcast %cst_20 : f32 to vector<128x32xf32>
    %32 = arith.cmpf ogt, %30, %31 : vector<128x32xf32>
    %33 = vector.broadcast %0 : f32 to vector<128x32xf32>
    %34 = arith.mulf %33, %30 : vector<128x32xf32>
    %35 = arith.select %32, %30, %34 : vector<128x32xi1>, vector<128x32xf32>
    %36 = arith.truncf %35 : vector<128x32xf32> to vector<128x32xbf16>
    %c0_21 = arith.constant 0 : index
    %c0_22 = arith.constant 0 : index
    %37 = vector.load %arg10[%c0_21, %c0_22] : memref<32x128xbf16, #tpu.memory_space<vmem>>, vector<32x128xbf16>
    %cst_23 = arith.constant dense<0.000000e+00> : vector<128x128xf32>
    %38 = tpu.matmul %36, %37, %cst_23 {dimension_numbers = #tpu.dot_dimension_numbers<[1], [0], [0], [1], [0, 0, 1, 1], [], []>} : vector<128x32xbf16>, vector<32x128xbf16>, vector<128x128xf32> -> vector<128x128xf32>
    %c0_24 = arith.constant 0 : index
    %c0_25 = arith.constant 0 : index
    %39 = vector.load %arg11[%c0_24, %c0_25] : memref<1x128xf32, #tpu.memory_space<vmem>>, vector<1x128xf32>
    %40 = vector.broadcast %39 : vector<1x128xf32> to vector<128x128xf32>
    %41 = arith.addf %38, %40 : vector<128x128xf32>
    %c0_26 = arith.constant 0 : index
    %c0_27 = arith.constant 0 : index
    %42 = vector.load %arg12[%c0_26, %c0_27] : memref<128x128xf32, #tpu.memory_space<vmem>>, vector<128x128xf32>
    tpu.vector_store %arg12[%c0_26, %c0_27], %41 {strides = array<i32>} : memref<128x128xf32, #tpu.memory_space<vmem>>, vector<128x128xf32>,
    return
  }
  func.func @transform_0(%arg0: i32) -> i32 {
    %c0_i32 = arith.constant 0 : i32
    %c0_i32_0 = arith.constant 0 : i32
    return %c0_i32 : i32
  }
  func.func @transform_1(%arg0: i32) -> (i32, i32) {
    %c0_i32 = arith.constant 0 : i32
    %c0_i32_0 = arith.constant 0 : i32
    %c0_i32_1 = arith.constant 0 : i32
    return %c0_i32, %c0_i32_0 : i32, i32
  }
  func.func @transform_2(%arg0: i32) -> (i32, i32) {
    %c0_i32 = arith.constant 0 : i32
    %c0_i32_0 = arith.constant 0 : i32
    return %arg0, %c0_i32 : i32, i32
  }
  func.func @transform_3(%arg0: i32) -> (i32, i32) {
    %c0_i32 = arith.constant 0 : i32
    %c0_i32_0 = arith.constant 0 : i32
    %c0_i32_1 = arith.constant 0 : i32
    return %c0_i32, %c0_i32_0 : i32, i32
  }
  func.func @transform_4(%arg0: i32) -> (i32, i32) {
    %c0_i32 = arith.constant 0 : i32
    %c0_i32_0 = arith.constant 0 : i32
    %c0_i32_1 = arith.constant 0 : i32
    return %c0_i32, %c0_i32_0 : i32, i32
  }
  func.func @transform_5(%arg0: i32) -> (i32, i32) {
    %c0_i32 = arith.constant 0 : i32
    %c0_i32_0 = arith.constant 0 : i32
    %c0_i32_1 = arith.constant 0 : i32
    return %c0_i32, %c0_i32_0 : i32, i32
  }
  func.func @transform_6(%arg0: i32) -> (i32, i32) {
    %c0_i32 = arith.constant 0 : i32
    %c0_i32_0 = arith.constant 0 : i32
    %c0_i32_1 = arith.constant 0 : i32
    return %c0_i32, %c0_i32_0 : i32, i32
  }
  func.func @transform_7(%arg0: i32) -> (i32, i32) {
    %c0_i32 = arith.constant 0 : i32
    %c0_i32_0 = arith.constant 0 : i32
    %c0_i32_1 = arith.constant 0 : i32
    return %c0_i32, %c0_i32_0 : i32, i32
  }
  func.func @transform_8(%arg0: i32) -> (i32, i32) {
    %c0_i32 = arith.constant 0 : i32
    %c0_i32_0 = arith.constant 0 : i32
    %c0_i32_1 = arith.constant 0 : i32
    return %c0_i32, %c0_i32_0 : i32, i32
  }
  func.func @transform_9(%arg0: i32) -> (i32, i32) {
    %c0_i32 = arith.constant 0 : i32
    %c0_i32_0 = arith.constant 0 : i32
    %c0_i32_1 = arith.constant 0 : i32
    return %c0_i32, %c0_i32_0 : i32, i32
  }
  func.func @transform_10(%arg0: i32) -> (i32, i32) {
    %c0_i32 = arith.constant 0 : i32
    %c0_i32_0 = arith.constant 0 : i32
    %c0_i32_1 = arith.constant 0 : i32
    return %c0_i32, %c0_i32_0 : i32, i32
  }
  func.func @transform_11(%arg0: i32) -> (i32, i32) {
    %c0_i32 = arith.constant 0 : i32
    %c0_i32_0 = arith.constant 0 : i32
    return %arg0, %c0_i32 : i32, i32
  }
}

module attributes {stable_mosaic.version = 11 : i64} {
  func.func @_sign_fused_kernel(%arg0: i32, %arg1: memref<2xf32, #tpu.memory_space<smem>>, %arg2: memref<1x96xf32, #tpu.memory_space<vmem>>, %arg3: memref<128x96xbf16, #tpu.memory_space<vmem>>, %arg4: memref<96x96xbf16, #tpu.memory_space<vmem>>, %arg5: memref<1x96xf32, #tpu.memory_space<vmem>>, %arg6: memref<96x96xbf16, #tpu.memory_space<vmem>>, %arg7: memref<1x96xf32, #tpu.memory_space<vmem>>, %arg8: memref<96x32xbf16, #tpu.memory_space<vmem>>, %arg9: memref<1x32xf32, #tpu.memory_space<vmem>>, %arg10: memref<32x128xbf16, #tpu.memory_space<vmem>>, %arg11: memref<1x128xf32, #tpu.memory_space<vmem>>, %arg12: memref<128x128xf32, #tpu.memory_space<vmem>>) attributes {dimension_semantics = [#tpu.dimension_semantics<parallel>], iteration_bounds = array<i64: 4>, scalar_prefetch = 0 : i64, scratch_operands = 0 : i64, tpu.core_type = #tpu.core_type<tc>, window_params = [{transform_indices = @transform_0, window_bounds = array<i64: 2>}, {pipeline_mode = #tpu.pipeline_mode<synchronous>, transform_indices = @transform_1, window_bounds = array<i64: 1, 96>}, {transform_indices = @transform_2, window_bounds = array<i64: 128, 96>}, {pipeline_mode = #tpu.pipeline_mode<synchronous>, transform_indices = @transform_3, window_bounds = array<i64: 96, 96>}, {pipeline_mode = #tpu.pipeline_mode<synchronous>, transform_indices = @transform_4, window_bounds = array<i64: 1, 96>}, {pipeline_mode = #tpu.pipeline_mode<synchronous>, transform_indices = @transform_5, window_bounds = array<i64: 96, 96>}, {pipeline_mode = #tpu.pipeline_mode<synchronous>, transform_indices = @transform_6, window_bounds = array<i64: 1, 96>}, {pipeline_mode = #tpu.pipeline_mode<synchronous>, transform_indices = @transform_7, window_bounds = array<i64: 96, 32>}, {pipeline_mode = #tpu.pipeline_mode<synchronous>, transform_indices = @transform_8, window_bounds = array<i64: 1, 32>}, {pipeline_mode = #tpu.pipeline_mode<synchronous>, transform_indices = @transform_9, window_bounds = array<i64: 32, 128>}, {pipeline_mode = #tpu.pipeline_mode<synchronous>, transform_indices = @transform_10, window_bounds = array<i64: 1, 128>}, {transform_indices = @transform_11, window_bounds = array<i64: 128, 128>}]} {
    %c0 = arith.constant 0 : index
    %0 = memref.load %arg1[%c0] : memref<2xf32, #tpu.memory_space<smem>>
    %c1 = arith.constant 1 : index
    %1 = memref.load %arg1[%c1] : memref<2xf32, #tpu.memory_space<smem>>
    %c0_0 = arith.constant 0 : index
    %c0_1 = arith.constant 0 : index
    %2 = vector.load %arg2[%c0_0, %c0_1] : memref<1x96xf32, #tpu.memory_space<vmem>>, vector<1x96xf32>
    %c0_2 = arith.constant 0 : index
    %c0_3 = arith.constant 0 : index
    %3 = vector.load %arg3[%c0_2, %c0_3] : memref<128x96xbf16, #tpu.memory_space<vmem>>, vector<128x96xbf16>
    %c0_4 = arith.constant 0 : index
    %c0_5 = arith.constant 0 : index
    %4 = vector.load %arg4[%c0_4, %c0_5] : memref<96x96xbf16, #tpu.memory_space<vmem>>, vector<96x96xbf16>
    %cst = arith.constant dense<0.000000e+00> : vector<128x96xf32>
    %5 = tpu.matmul %3, %4, %cst {dimension_numbers = #tpu.dot_dimension_numbers<[1], [0], [0], [1], [0, 0, 1, 1], [], []>} : vector<128x96xbf16>, vector<96x96xbf16>, vector<128x96xf32> -> vector<128x96xf32>
    %c0_6 = arith.constant 0 : index
    %c0_7 = arith.constant 0 : index
    %6 = vector.load %arg5[%c0_6, %c0_7] : memref<1x96xf32, #tpu.memory_space<vmem>>, vector<1x96xf32>
    %7 = vector.broadcast %6 : vector<1x96xf32> to vector<128x96xf32>
    %8 = arith.addf %5, %7 : vector<128x96xf32>
    %cst_8 = arith.constant 0.000000e+00 : f32
    %9 = vector.broadcast %cst_8 : f32 to vector<128x96xf32>
    %10 = arith.cmpf ogt, %8, %9 : vector<128x96xf32>
    %11 = vector.broadcast %2 : vector<1x96xf32> to vector<128x96xf32>
    %12 = arith.mulf %11, %8 : vector<128x96xf32>
    %13 = arith.select %10, %8, %12 : vector<128x96xi1>, vector<128x96xf32>
    %14 = arith.truncf %13 : vector<128x96xf32> to vector<128x96xbf16>
    %c0_9 = arith.constant 0 : index
    %c0_10 = arith.constant 0 : index
    %15 = vector.load %arg6[%c0_9, %c0_10] : memref<96x96xbf16, #tpu.memory_space<vmem>>, vector<96x96xbf16>
    %cst_11 = arith.constant dense<0.000000e+00> : vector<128x96xf32>
    %16 = tpu.matmul %14, %15, %cst_11 {dimension_numbers = #tpu.dot_dimension_numbers<[1], [0], [0], [1], [0, 0, 1, 1], [], []>} : vector<128x96xbf16>, vector<96x96xbf16>, vector<128x96xf32> -> vector<128x96xf32>
    %c0_12 = arith.constant 0 : index
    %c0_13 = arith.constant 0 : index
    %17 = vector.load %arg7[%c0_12, %c0_13] : memref<1x96xf32, #tpu.memory_space<vmem>>, vector<1x96xf32>
    %18 = vector.broadcast %17 : vector<1x96xf32> to vector<128x96xf32>
    %19 = arith.addf %16, %18 : vector<128x96xf32>
    %cst_14 = arith.constant 0.000000e+00 : f32
    %20 = vector.broadcast %cst_14 : f32 to vector<128x96xf32>
    %21 = arith.cmpf ogt, %19, %20 : vector<128x96xf32>
    %22 = vector.broadcast %1 : f32 to vector<128x96xf32>
    %23 = arith.mulf %22, %19 : vector<128x96xf32>
    %24 = arith.select %21, %19, %23 : vector<128x96xi1>, vector<128x96xf32>
    %25 = arith.truncf %24 : vector<128x96xf32> to vector<128x96xbf16>
    %c0_15 = arith.constant 0 : index
    %c0_16 = arith.constant 0 : index
    %26 = vector.load %arg8[%c0_15, %c0_16] : memref<96x32xbf16, #tpu.memory_space<vmem>>, vector<96x32xbf16>
    %cst_17 = arith.constant dense<0.000000e+00> : vector<128x32xf32>
    %27 = tpu.matmul %25, %26, %cst_17 {dimension_numbers = #tpu.dot_dimension_numbers<[1], [0], [0], [1], [0, 0, 1, 1], [], []>} : vector<128x96xbf16>, vector<96x32xbf16>, vector<128x32xf32> -> vector<128x32xf32>
    %c0_18 = arith.constant 0 : index
    %c0_19 = arith.constant 0 : index
    %28 = vector.load %arg9[%c0_18, %c0_19] : memref<1x32xf32, #tpu.memory_space<vmem>>, vector<1x32xf32>
    %29 = vector.broadcast %28 : vector<1x32xf32> to vector<128x32xf32>
    %30 = arith.addf %27, %29 : vector<128x32xf32>
    %cst_20 = arith.constant 0.000000e+00 : f32
    %31 = vector.broadcast %cst_20 : f32 to vector<128x32xf32>
    %32 = arith.cmpf ogt, %30, %31 : vector<128x32xf32>
    %33 = vector.broadcast %0 : f32 to vector<128x32xf32>
    %34 = arith.mulf %33, %30 : vector<128x32xf32>
    %35 = arith.select %32, %30, %34 : vector<128x32xi1>, vector<128x32xf32>
    %36 = arith.truncf %35 : vector<128x32xf32> to vector<128x32xbf16>
    %c0_21 = arith.constant 0 : index
    %c0_22 = arith.constant 0 : index
    %37 = vector.load %arg10[%c0_21, %c0_22] : memref<32x128xbf16, #tpu.memory_space<vmem>>, vector<32x128xbf16>
    %cst_23 = arith.constant dense<0.000000e+00> : vector<128x128xf32>
    %38 = tpu.matmul %36, %37, %cst_23 {dimension_numbers = #tpu.dot_dimension_numbers<[1], [0], [0], [1], [0, 0, 1, 1], [], []>} : vector<128x32xbf16>, vector<32x128xbf16>, vector<128x128xf32> -> vector<128x128xf32>
    %c0_24 = arith.constant 0 : index
    %c0_25 = arith.constant 0 : index
    %39 = vector.load %arg11[%c0_24, %c0_25] : memref<1x128xf32, #tpu.memory_space<vmem>>, vector<1x128xf32>
    %40 = vector.broadcast %39 : vector<1x128xf32> to vector<128x128xf32>
    %41 = arith.addf %38, %40 : vector<128x128xf32>
    %c0_26 = arith.constant 0 : index
    %c0_27 = arith.constant 0 : index
    %42 = vector.load %arg12[%c0_26, %c0_27] : memref<128x128xf32, #tpu.memory_space<vmem>>, vector<128x128xf32>
    tpu.vector_store %arg12[%c0_26, %c0_27], %41 {strides = array<i32>} : memref<128x128xf32, #tpu.memory_space<vmem>>, vector<128x128xf32>,
    return
  }
  func.func @transform_0(%arg0: i32) -> i32 {
    %c0_i32 = arith.constant 0 : i32
    %c0_i32_0 = arith.constant 0 : i32
    return %c0_i32 : i32
  }
  func.func @transform_1(%arg0: i32) -> (i32, i32) {
    %c0_i32 = arith.constant 0 : i32
    %c0_i32_0 = arith.constant 0 : i32
    %c0_i32_1 = arith.constant 0 : i32
    return %c0_i32, %c0_i32_0 : i32, i32
  }
  func.func @transform_2(%arg0: i32) -> (i32, i32) {
    %c0_i32 = arith.constant 0 : i32
    %c0_i32_0 = arith.constant 0 : i32
    return %arg0, %c0_i32 : i32, i32
  }
  func.func @transform_3(%arg0: i32) -> (i32, i32) {
    %c0_i32 = arith.constant 0 : i32
    %c0_i32_0 = arith.constant 0 : i32
    %c0_i32_1 = arith.constant 0 : i32
    return %c0_i32, %c0_i32_0 : i32, i32
  }
  func.func @transform_4(%arg0: i32) -> (i32, i32) {
    %c0_i32 = arith.constant 0 : i32
    %c0_i32_0 = arith.constant 0 : i32
    %c0_i32_1 = arith.constant 0 : i32
    return %c0_i32, %c0_i32_0 : i32, i32
  }
  func.func @transform_5(%arg0: i32) -> (i32, i32) {
    %c0_i32 = arith.constant 0 : i32
    %c0_i32_0 = arith.constant 0 : i32
    %c0_i32_1 = arith.constant 0 : i32
    return %c0_i32, %c0_i32_0 : i32, i32
  }
  func.func @transform_6(%arg0: i32) -> (i32, i32) {
    %c0_i32 = arith.constant 0 : i32
    %c0_i32_0 = arith.constant 0 : i32
    %c0_i32_1 = arith.constant 0 : i32
    return %c0_i32, %c0_i32_0 : i32, i32
  }
  func.func @transform_7(%arg0: i32) -> (i32, i32) {
    %c0_i32 = arith.constant 0 : i32
    %c0_i32_0 = arith.constant 0 : i32
    %c0_i32_1 = arith.constant 0 : i32
    return %c0_i32, %c0_i32_0 : i32, i32
  }
  func.func @transform_8(%arg0: i32) -> (i32, i32) {
    %c0_i32 = arith.constant 0 : i32
    %c0_i32_0 = arith.constant 0 : i32
    %c0_i32_1 = arith.constant 0 : i32
    return %c0_i32, %c0_i32_0 : i32, i32
  }
  func.func @transform_9(%arg0: i32) -> (i32, i32) {
    %c0_i32 = arith.constant 0 : i32
    %c0_i32_0 = arith.constant 0 : i32
    %c0_i32_1 = arith.constant 0 : i32
    return %c0_i32, %c0_i32_0 : i32, i32
  }
  func.func @transform_10(%arg0: i32) -> (i32, i32) {
    %c0_i32 = arith.constant 0 : i32
    %c0_i32_0 = arith.constant 0 : i32
    %c0_i32_1 = arith.constant 0 : i32
    return %c0_i32, %c0_i32_0 : i32, i32
  }
  func.func @transform_11(%arg0: i32) -> (i32, i32) {
    %c0_i32 = arith.constant 0 : i32
    %c0_i32_0 = arith.constant 0 : i32
    return %arg0, %c0_i32 : i32, i32
  }
}

</mosaic_0001>

<bundles_post_ra>
// kernel: tpu_custom_call.1
= control target key start
LH: loop header
LB: loop body
LE: loop exit
PB: predicated region body
PF: predicated region fallthrough
CT: control target
= control target key end

     0   :  { %s2296_s0 = inlined_call_operand.vmem [shape: f32[2], index: 0, kind: input, shape index: {}]   ;;  %s2297_s1 = inlined_call_operand.vmem [shape: f32[1,96], index: 1, kind: input, shape index: {}]   ;;  %s2298_s2 = inlined_call_operand.vmem [shape: bf16[400,96], index: 2, kind: input, shape index: {}]   ;;  %s2299_s3 = inlined_call_operand.vmem [shape: bf16[96,96], index: 3, kind: input, shape index: {}]   ;;  %s2300_s4 = inlined_call_operand.vmem [shape: f32[1,96], index: 4, kind: input, shape index: {}]   ;;  %s2301_s5 = inlined_call_operand.vmem [shape: bf16[96,96], index: 5, kind: input, shape index: {}]   ;;  %s2302_s6 = inlined_call_operand.vmem [shape: f32[1,96], index: 6, kind: input, shape index: {}]   ;;  %s2303_s7 = inlined_call_operand.vmem [shape: bf16[96,32], index: 7, kind: input, shape index: {}]   ;;  %s2304_s8 = inlined_call_operand.vmem [shape: f32[1,32], index: 8, kind: input, shape index: {}]   ;;  %s2305_s9 = inlined_call_operand.vmem [shape: bf16[32,128], index: 9, kind: input, shape index: {}]   ;;  %s2306_s10 = inlined_call_operand.vmem [shape: f32[1,128], index: 10, kind: input, shape index: {}]   ;;  %s2307_s11 = inlined_call_operand.hbm [shape: f32[400,128], index: 11, kind: output, shape index: {}]  }
   0x1   :  { %2308 = sst [smem:[#allocation9_spill]] %s2296_s0 }
   0x2   :  { %16 = vsyncpa [#allocation4], 0 }
   0x3   :  { %17 = vsyncpa [#allocation3], 0 }
   0x4   :  { %19 = vsyncpa [#allocation3 + $0x1], 0  ;;  %s1913_s17 = smov 0   ;;  %s1915_s18 = smov 0  }
   0x5   :  { %s1917_s19 = smov 0   ;;  %s1919_s20 = smov 0  }
   0x6 LB: > { %s1934_s21 = sadd.s32 4294967295, %s1847_s20   ;;  %s1446_s22 = sadd.s32 4294967294, %s1847_s20   ;;  %s1847_s20 = sphi %s1919_s20, %s2318_s20   ;;  %s1843_s19 = sphi %s1917_s19, %s2317_s19   ;;  %s1839_s18 = sphi %s1915_s18, %s2316_s18   ;;  %s1835_s17 = sphi %s1913_s17, %s2315_s17  }
   0x7   : > { %s1938_s23 = sadd.s32 1, %s1847_s20   ;;  %s268_s24 = sadd.s32 1, %s1843_s19 }
   0x8   : > { %s265_s25 = ssub.s32 %s1847_s20, %s1938_s23  ;;  %p278_p0 = scmp.ne.s32.totalorder %s1843_s19, %s1839_s18 }
   0x9   : > { %p266_p1 = scmp.eq.s32.totalorder %s265_s25, 0  ;;  %p279_p2 = scmp.eq.s32.totalorder %s1934_s21, 3 }
   0xa   : > { %p284_p3 = scmp.ne.s32.totalorder %s1839_s18, %s1835_s17  ;;  %p285_p4 = scmp.eq.s32.totalorder %s1446_s22, 3 }
   0xb   : > { %s1949_s26 = scalar_select %p266_p1, %s1843_s19, %s268_s24  }
   0xc   : > { %p1951_p5 = por %p279_p2, %p278_p0  ;;  %p1955_p6 = por %p285_p4, %p284_p3 }
   0xd   : > { %2309 = sst [smem:[#allocation8_spill]] %s1949_s26  ;;  %p1447_p7 = scmp.ge.s32.totalorder %s1847_s20, 1 }
   0xe   : > { %p292_p8 = scmp.lt.s32.totalorder %s1847_s20, 5  ;;  %p1700_p9 = scmp.eq.s32.totalorder %s1934_s21, 0 }
   0xf   : > { %s2313_s0 = sld [smem:[#allocation9_spill]] }
  0x10   : > { %p1962_p10 = pnand %p1447_p7, %p292_p8 }
  0x12   : > { %p1692_p11 = pneg %p1962_p10 }
  0x14   : > { %p1693_p12 = pnand %p1700_p9, %p1692_p11 }
  0x15   : > { %s305_s13 = sshll.u32 %s2313_s0, 4  ;;  %s306_s13 = int_to_ptr.vmem [resolvable:$true] %s305_s13 }
  0x16   : > { %s1766_s14 = scalar_lea.vmem %s306_s13, 16  ;;  %p1768_p0 = pneg %p1693_p12 }
  0x17   : > { %p1767_p13 = scmp.ne.s32.totalorder %s306_s13, %s1766_s14  ;;  %p1774_p3 = scmp.lt.s32.totalorder %s306_s13, %s306_s13 }
  0x18   : > { %p1775_p4 = scmp.lt.s32.totalorder %s1766_s14, %s1766_s14 }
  0x19   : > { %p1769_p1 = pnand %p1768_p0, %p1767_p13 }
  0x1a   : > { %p1776_p7 = por %p1775_p4, %p1774_p3 }
  0x1b   : > { %p1770_p2 = pneg %p1769_p1 }
  0x1d   : > { %p1777_p8 = pnand %p1776_p7, %p1770_p2 }
  0x1f   : > { %1780 = shalt.err (!%p1777_p8)
}
  0x20   : > { %s1849_s15 = smov [#allocation2]   ;;  %362 = sbr.rel (%p1962_p10) target bundleno = 1006 (0x3ee), region = 64 }
  0x21   : > { %1695 = dma.vmem_to_smem (!%p1693_p12), %s306_s13, 16, %s1849_s15, [#allocation4]  }
  0x27   : > { %1826 = dma.done.wait (%p1700_p9), [#allocation4], 16  }
  0x28   : > { %1828 = vsyncadd (%p1700_p9), [#allocation4], 4294967280 }
  0x29   : > { %368 = sfence }
  0x2a   : > { %v1738_v0 = vld [vmem:[%s2299_s3] sm:$0xff]   ;;  %s1983_s24 = sshll.u32 %s1934_s21, 4  ;;  %v1739_v1 = vld [vmem:[%s2299_s3 + $0x8] sm:$0xff]   ;;  %v1740_v2 = vld [vmem:[%s2299_s3 + $0x10] sm:$0xff]   ;;  %vm541_vm0 = vcmask 785408   ;;  %s1455_s13 = sld [smem:[#allocation2 + $0x1]] }
  0x2b   : > { %p412_p10 = scmp.lt.s32.totalorder %s1983_s24, 49  ;;  %1583 = vmatprep.subr.bf16.mxu0 %v1738_v0  ;;  %v1752_v3 = vld [vmem:[%s2301_s5] sm:$0xff]   ;;  %v1741_v5 = vld [vmem:[%s2299_s3 + $0x18] sm:$0xff]   ;;  %v1743_v7 = vld [vmem:[%s2299_s3 + $0x28] sm:$0xff]   ;;  %s427_s0 = sld [smem:[#allocation2]] }
  0x2c   : > { %1584 = vmatpush3.bf16.msra.mxu0 %v1738_v0  ;;  %1611 = vmatprep.subr.bf16.mxu1 %v1752_v3  ;;  %v1742_v6 = vld [vmem:[%s2299_s3 + $0x20] sm:$0xff]   ;;  %v1753_v8 = vld [vmem:[%s2301_s5 + $0x8] sm:$0xff]   ;;  %v1754_v9 = vld [vmem:[%s2301_s5 + $0x10] sm:$0xff]   ;;  %s404_s16 = sand.u32 1, %s1839_s18  }
  0x2d   : > { %s413_s29 = scalar_select %p412_p10, %s1983_s24, 49  ;;  %1585 = vmatprep.subr.bf16.mxu0 %v1739_v1  ;;  %1612 = vmatpush3.bf16.msra.mxu1 %v1752_v3  ;;  %v1755_v17 = vld [vmem:[%s2301_s5 + $0x18] sm:$0xff]   ;;  %v1756_v18 = vld [vmem:[%s2301_s5 + $0x20] sm:$0xff]   ;;  %v1757_v19 = vld [vmem:[%s2301_s5 + $0x28] sm:$0xff]  }
  0x2e   : > { %1613 = vmatprep.subr.bf16.mxu1 %v1753_v8  ;;  %v1758_v20 = vld [vmem:[%s2303_s7] sm:$0xff]   ;;  %v1759_v21 = vld [vmem:[%s2303_s7 + $0x8] sm:$0xff]   ;;  %v1760_v22 = vld [vmem:[%s2303_s7 + $0x10] sm:$0xff]   ;;  %s1452_s25 = sshll.u32 %s404_s16, 7 }
  0x2f   : > { %s1454_s14 = sshll.u32 %s413_s29, 2  ;;  %v1761_v23 = vld [vmem:[%s2303_s7 + $0x18] sm:$0xff]   ;;  %v2056_v24 = vld [vmem:[%s2300_s4] ss:$0 sm:$0xff]  ;;  %s2215_s12 = scalar_lea.vmem [#allocation5], %s1452_s25 }
  0x30   : > { %s1996_s22 = scalar_lea.vmem %s2298_s2, %s1454_s14  ;;  %1586 = vmatpush3.bf16.msra.mxu0 %v1739_v1  ;;  %v2061_v25 = vld [vmem:[%s2297_s1] ss:$0 sm:$0xff]  ;;  %s1361_s14 = ssub.s32 (%p1951_p5), 50, %s1983_s24 }
  0x31   : > { %v1744_v4 = vld [vmem:[%s1996_s22] sm:$0xff]   ;;  %1587 = vmatprep.subr.bf16.mxu0 %v1740_v2  ;;  %1614 = vmatpush3.bf16.msra.mxu1 %v1753_v8  ;;  %v1745_v10 = vld [vmem:[%s1996_s22 + $0x8] sm:$0xff]   ;;  %v1746_v11 = vld [vmem:[%s1996_s22 + $0x10] sm:$0xff]   ;;  %p1362_p9 = scmp.lt.s32.totalorder (%p1951_p5), %s1361_s14, 16 }
  0x32   : > { %1595 = vmatprep.mubr.msk.bf16.mxu0 %vm541_vm0, %v1744_v4  ;;  %1615 = vmatprep.subr.bf16.mxu1 %v1754_v9  ;;  %v1747_v12 = vld [vmem:[%s1996_s22 + $0x18] sm:$0xff]   ;;  %v1748_v13 = vld [vmem:[%s1996_s22 + $0x20] sm:$0xff]   ;;  %v1749_v14 = vld [vmem:[%s1996_s22 + $0x28] sm:$0xff]  }
  0x33   : > { %v1750_v15 = vld [vmem:[%s1996_s22 + $0x30] sm:$0xff]   ;;  %v1751_v16 = vld [vmem:[%s1996_s22 + $0x38] sm:$0xff]  }
  0x34   : > { %1588 = vmatpush3.bf16.msra.mxu0 %v1740_v2 }
  0x35   : > { %1589 = vmatprep.subr.bf16.mxu0 %v1741_v5  ;;  %1616 = vmatpush3.bf16.msra.mxu1 %v1754_v9 }
  0x36   : > { %1617 = vmatprep.subr.bf16.mxu1 %v1755_v17 }
  0x38   : > { %1590 = vmatpush3.bf16.msra.mxu0 %v1741_v5 }
  0x39   : > { %1591 = vmatprep.subr.bf16.mxu0 %v1742_v6  ;;  %1618 = vmatpush3.bf16.msra.mxu1 %v1755_v17 }
  0x3a   : > { %1619 = vmatprep.subr.bf16.mxu1 %v1756_v18 }
  0x3c   : > { %1592 = vmatpush3.bf16.msra.mxu0 %v1742_v6 }
  0x3d   : > { %1593 = vmatprep.subr.bf16.mxu0 %v1743_v7  ;;  %1620 = vmatpush3.bf16.msra.mxu1 %v1756_v18 }
  0x3e   : > { %1621 = vmatprep.subr.bf16.mxu1 %v1757_v19 }
  0x40   : > { %1594 = vmatpush3.bf16.msra.mxu0 %v1743_v7 }
  0x41   : > { %1622 = vmatpush3.bf16.msra.mxu1 %v1757_v19  ;;  %1639 = vmatprep.subr.bf16.mxu0 %v1758_v20 }
  0x43   : > { %1596 = vmatmul.mubr.msk.bf16.vlgmr.msra.gmra.mrb[0].mxu0 %vm541_vm0, %v1745_v10 }
  0x44   : > { %1599 = vmatprep.mubr.msk.bf16.mxu0 %vm541_vm0, %v1746_v11  ;;  %1640 = vmatpush3.bf16.msra.mxu0 %v1758_v20 }
  0x45   : > { %1641 = vmatprep.subr.bf16.mxu0 %v1759_v21 }
  0x48   : > { %1642 = vmatpush3.bf16.msra.mxu0 %v1759_v21 }
  0x49   : > { %1643 = vmatprep.subr.bf16.mxu0 %v1760_v22 }
  0x4b   : > { %1600 = vmatmul.mubr.msk.bf16.gmra.mrb[4].mxu0 %vm541_vm0, %v1747_v12 }
  0x4c   : > { %1603 = vmatprep.mubr.msk.bf16.mxu0 %vm541_vm0, %v1748_v13  ;;  %1644 = vmatpush3.bf16.msra.mxu0 %v1760_v22 }
  0x4d   : > { %1645 = vmatprep.subr.bf16.mxu0 %v1761_v23 }
  0x50   : > { %1646 = vmatpush3.bf16.msra.mxu0 %v1761_v23 }
  0x53   : > { %1604 = vmatmul.mubr.msk.bf16.gmra.mrb[8].mxu0 %vm541_vm0, %v1749_v14 }
  0x54   : > { %1607 = vmatprep.mubr.msk.bf16.mxu0 %vm541_vm0, %v1750_v15 }
  0x5b   : > { %1608 = vmatmul.mubr.msk.bf16.gmra.mrb[12].mxu0 %vm541_vm0, %v1751_v16 }
 0x116   : > { %v1597_v26 = vpop.f32.mrb[0].mxu0 }
 0x117   : > { %v609_v27 = vadd.f32 %v1597_v26, %v2056_v24  ;;  %v600_v28 = vpop.f32.mrb[1].mxu0 }
 0x118   : > { %v601_v29 = vadd.f32 %v2056_v24, %v600_v28  ;;  %v1598_v30 = vpop.f32.mrb[2].mxu0 }
 0x119   : > { %v687_v31 = vmul.f32 %v2061_v25, %v609_v27  ;;  %v612_v32 = vadd.f32 %v1598_v30, %v2056_v24  ;;  %v603_v33 = vpop.f32.mrb[3].mxu0  ;;  %vm665_vm1 = vcmp.gt.f32.partialorder %v609_v27, 0.0 }
 0x11a   : > { %v685_v34 = vmul.f32 %v2061_v25, %v601_v29  ;;  %v604_v35 = vadd.f32 %v2056_v24, %v603_v33  ;;  %vm663_vm3 = vcmp.gt.f32.partialorder %v601_v29, 0.0 }
 0x11b   : > { %vm666_vm2 = vcmp.gt.f32.partialorder %v612_v32, 0.0  ;;  %v688_v36 = vmul.f32 %v2061_v25, %v612_v32  ;;  %v703_v38 = vsel %vm665_vm1, %v609_v27, %v687_v31 }
 0x11c   : > { %v686_v37 = vmul.f32 %v2061_v25, %v604_v35  ;;  %vm664_vm4 = vcmp.gt.f32.partialorder %v604_v35, 0.0  ;;  %v701_v42 = vsel %vm663_vm3, %v601_v29, %v685_v34 }
 0x11d   : > { %v704_v39 = vsel %vm666_vm2, %v612_v32, %v688_v36  ;;  %v1764_v36 = vld [vmem:[%s2305_s9] sm:$0xff]  }
 0x11e   : > { %v718_v40 = vpack.c.bf16 %v704_v39, %v703_v38  ;;  %v1601_v41 = vpop.f32.mrb[4].mxu0  ;;  %v702_v43 = vsel %vm664_vm4, %v604_v35, %v686_v37  ;;  %v1765_v37 = vld [vmem:[%s2305_s9 + $0x8] sm:$0xff]   ;;  %1667 = vmatprep.subr.bf16.mxu1 %v1764_v36  ;;  %v2118_v38 = vld [vmem:[%s2302_s6] ss:$0 sm:$0xff] }
 0x11f   : > { %v625_v44 = vadd.f32 %v1601_v41, %v2056_v24  ;;  %v616_v45 = vpop.f32.mrb[5].mxu0  ;;  %v717_v46 = vpack.c.bf16 %v702_v43, %v701_v42 }
 0x120   : > { %v617_v47 = vadd.f32 %v2056_v24, %v616_v45  ;;  %v1602_v48 = vpop.f32.mrb[6].mxu0 }
 0x121   : > { %v691_v49 = vmul.f32 %v2061_v25, %v625_v44  ;;  %v628_v50 = vadd.f32 %v1602_v48, %v2056_v24  ;;  %v619_v51 = vpop.f32.mrb[7].mxu0  ;;  %1623 = vmatprep.mubr.msk.bf16.mxu1 %vm541_vm0, %v717_v46  ;;  %vm669_vm5 = vcmp.gt.f32.partialorder %v625_v44, 0.0 }
 0x122   : > { %v689_v52 = vmul.f32 %v2061_v25, %v617_v47  ;;  %v620_v53 = vadd.f32 %v2056_v24, %v619_v51  ;;  %1624 = vmatmul.mubr.msk.bf16.vlgmr.msra.gmra.mrb[0].mxu1 %vm541_vm0, %v718_v40  ;;  %vm667_vm6 = vcmp.gt.f32.partialorder %v617_v47, 0.0  ;;  %v2120_v40 = vstv %s1455_s13  ;;  %s2235_s13 = scalar_lea.sflag [#allocation3], %s404_s16 }
 0x123   : > { %vm670_vm7 = vcmp.gt.f32.partialorder %v628_v50, 0.0  ;;  %v692_v54 = vmul.f32 %v2061_v25, %v628_v50  ;;  %v707_v56 = vsel %vm669_vm5, %v625_v44, %v691_v49  ;;  %1668 = vmatpush3.bf16.msra.mxu1 %v1764_v36 }
 0x124   : > { %vm668_vm8 = vcmp.gt.f32.partialorder %v620_v53, 0.0  ;;  %v690_v55 = vmul.f32 %v2061_v25, %v620_v53  ;;  %v705_v58 = vsel %vm667_vm6, %v617_v47, %v689_v52  ;;  %1669 = vmatprep.subr.bf16.mxu1 %v1765_v37 }
 0x125   : > { %v708_v57 = vsel %vm670_vm7, %v628_v50, %v692_v54 }
 0x126   : > { %v720_v59 = vpack.c.bf16 %v708_v57, %v707_v56  ;;  %v706_v60 = vsel %vm668_vm8, %v620_v53, %v690_v55  ;;  %v1605_v61 = vpop.f32.mrb[8].mxu0 }
 0x127   : > { %v719_v62 = vpack.c.bf16 %v706_v60, %v705_v58  ;;  %v641_v63 = vadd.f32 %v1605_v61, %v2056_v24  ;;  %v632_v0 = vpop.f32.mrb[9].mxu0  ;;  %1670 = vmatpush3.bf16.msra.mxu1 %v1765_v37 }
 0x128   : > { %v633_v1 = vadd.f32 %v2056_v24, %v632_v0  ;;  %v1606_v2 = vpop.f32.mrb[10].mxu0 }
 0x129   : > { %v695_v3 = vmul.f32 %v2061_v25, %v641_v63  ;;  %v644_v4 = vadd.f32 %v1606_v2, %v2056_v24  ;;  %v635_v5 = vpop.f32.mrb[11].mxu0  ;;  %1627 = vmatprep.mubr.msk.bf16.mxu1 %vm541_vm0, %v719_v62  ;;  %vm673_vm9 = vcmp.gt.f32.partialorder %v641_v63, 0.0 }
 0x12a   : > { %v693_v6 = vmul.f32 %v2061_v25, %v633_v1  ;;  %v636_v7 = vadd.f32 %v2056_v24, %v635_v5  ;;  %1628 = vmatmul.mubr.msk.bf16.gmra.mrb[4].mxu1 %vm541_vm0, %v720_v59  ;;  %vm671_vm10 = vcmp.gt.f32.partialorder %v633_v1, 0.0 }
 0x12b   : > { %vm674_vm11 = vcmp.gt.f32.partialorder %v644_v4, 0.0  ;;  %v696_v8 = vmul.f32 %v2061_v25, %v644_v4  ;;  %v711_v10 = vsel %vm673_vm9, %v641_v63, %v695_v3 }
 0x12c   : > { %vm672_vm12 = vcmp.gt.f32.partialorder %v636_v7, 0.0  ;;  %v694_v9 = vmul.f32 %v2061_v25, %v636_v7  ;;  %v709_v12 = vsel %vm671_vm10, %v633_v1, %v693_v6 }
 0x12d   : > { %v712_v11 = vsel %vm674_vm11, %v644_v4, %v696_v8 }
 0x12e   : > { %v722_v13 = vpack.c.bf16 %v712_v11, %v711_v10  ;;  %v710_v14 = vsel %vm672_vm12, %v636_v7, %v694_v9  ;;  %v1609_v15 = vpop.f32.mrb[12].mxu0 }
 0x12f   : > { %v721_v16 = vpack.c.bf16 %v710_v14, %v709_v12  ;;  %v657_v17 = vadd.f32 %v1609_v15, %v2056_v24  ;;  %v648_v18 = vpop.f32.mrb[13].mxu0 }
 0x130   : > { %v649_v19 = vadd.f32 %v2056_v24, %v648_v18  ;;  %v1610_v20 = vpop.f32.mrb[14].mxu0 }
 0x131   : > { %v699_v21 = vmul.f32 %v2061_v25, %v657_v17  ;;  %v660_v22 = vadd.f32 %v1610_v20, %v2056_v24  ;;  %v651_v23 = vpop.f32.mrb[15].mxu0  ;;  %1631 = vmatprep.mubr.msk.bf16.mxu1 %vm541_vm0, %v721_v16  ;;  %vm677_vm13 = vcmp.gt.f32.partialorder %v657_v17, 0.0 }
 0x132   : > { %v697_v26 = vmul.f32 %v2061_v25, %v649_v19  ;;  %v652_v27 = vadd.f32 %v2056_v24, %v651_v23  ;;  %1632 = vmatmul.mubr.msk.bf16.gmra.mrb[8].mxu1 %vm541_vm0, %v722_v13  ;;  %vm675_vm14 = vcmp.gt.f32.partialorder %v649_v19, 0.0  ;;  %v1762_v24 = vld [vmem:[%s2303_s7 + $0x20] sm:$0xff]  }
 0x133   : > { %vm678_vm15 = vcmp.gt.f32.partialorder %v660_v22, 0.0  ;;  %v700_v28 = vmul.f32 %v2061_v25, %v660_v22  ;;  %v715_v30 = vsel %vm677_vm13, %v657_v17, %v699_v21  ;;  %1647 = vmatprep.subr.bf16.mxu0 %v1762_v24 }
 0x134   : > { %vm676_vm1 = vcmp.gt.f32.partialorder %v652_v27, 0.0  ;;  %v698_v29 = vmul.f32 %v2061_v25, %v652_v27  ;;  %v713_v32 = vsel %vm675_vm14, %v649_v19, %v697_v26  ;;  %1648 = vmatpush3.bf16.msra.mxu0 %v1762_v24  ;;  %v1763_v25 = vld [vmem:[%s2303_s7 + $0x28] sm:$0xff]  }
 0x135   : > { %v716_v31 = vsel %vm678_vm15, %v660_v22, %v700_v28  ;;  %1649 = vmatprep.subr.bf16.mxu0 %v1763_v25 }
 0x136   : > { %v724_v33 = vpack.c.bf16 %v716_v31, %v715_v30  ;;  %v714_v34 = vsel %vm676_vm1, %v652_v27, %v698_v29 }
 0x137   : > { %v723_v35 = vpack.c.bf16 %v714_v34, %v713_v32 }
 0x138   : > { %1650 = vmatpush3.bf16.msra.mxu0 %v1763_v25 }
 0x139   : > { %1635 = vmatprep.mubr.msk.bf16.mxu1 %vm541_vm0, %v723_v35 }
 0x13a   : > { %1636 = vmatmul.mubr.msk.bf16.gmra.mrb[12].mxu1 %vm541_vm0, %v724_v33 }
 0x1f5   : > { %v1625_v39 = vpop.f32.mrb[0].mxu1 }
 0x1f6   : > { %v847_v41 = vadd.f32 %v1625_v39, %v2118_v38  ;;  %v838_v42 = vpop.f32.mrb[1].mxu1 }
 0x1f7   : > { %v839_v43 = vadd.f32 %v2118_v38, %v838_v42  ;;  %v1626_v44 = vpop.f32.mrb[2].mxu1 }
 0x1f8   : > { %v920_v45 = vmul.f32 %v2120_v40, %v847_v41  ;;  %v850_v46 = vadd.f32 %v1626_v44, %v2118_v38  ;;  %v841_v47 = vpop.f32.mrb[3].mxu1  ;;  %vm903_vm2 = vcmp.gt.f32.partialorder %v847_v41, 0.0 }
 0x1f9   : > { %v918_v48 = vmul.f32 %v2120_v40, %v839_v43  ;;  %v842_v49 = vadd.f32 %v2118_v38, %v841_v47  ;;  %vm901_vm3 = vcmp.gt.f32.partialorder %v839_v43, 0.0 }
 0x1fa   : > { %vm904_vm4 = vcmp.gt.f32.partialorder %v850_v46, 0.0  ;;  %v921_v50 = vmul.f32 %v2120_v40, %v850_v46  ;;  %v936_v52 = vsel %vm903_vm2, %v847_v41, %v920_v45 }
 0x1fb   : > { %vm902_vm5 = vcmp.gt.f32.partialorder %v842_v49, 0.0  ;;  %v919_v51 = vmul.f32 %v2120_v40, %v842_v49  ;;  %v934_v54 = vsel %vm901_vm3, %v839_v43, %v918_v48 }
 0x1fc   : > { %v937_v53 = vsel %vm904_vm4, %v850_v46, %v921_v50 }
 0x1fd   : > { %v951_v55 = vpack.c.bf16 %v937_v53, %v936_v52  ;;  %v935_v56 = vsel %vm902_vm5, %v842_v49, %v919_v51  ;;  %v1629_v57 = vpop.f32.mrb[4].mxu1  ;;  %v2167_v51 = vstv %s427_s0 }
 0x1fe   : > { %v950_v58 = vpack.c.bf16 %v935_v56, %v934_v54  ;;  %v863_v59 = vadd.f32 %v1629_v57, %v2118_v38  ;;  %v854_v60 = vpop.f32.mrb[5].mxu1 }
 0x1ff   : > { %v855_v61 = vadd.f32 %v2118_v38, %v854_v60  ;;  %v1630_v62 = vpop.f32.mrb[6].mxu1 }
 0x200   : > { %v924_v63 = vmul.f32 %v2120_v40, %v863_v59  ;;  %v866_v0 = vadd.f32 %v1630_v62, %v2118_v38  ;;  %v857_v1 = vpop.f32.mrb[7].mxu1  ;;  %1651 = vmatprep.mubr.msk.bf16.mxu0 %vm541_vm0, %v950_v58  ;;  %vm907_vm6 = vcmp.gt.f32.partialorder %v863_v59, 0.0 }
 0x201   : > { %v922_v2 = vmul.f32 %v2120_v40, %v855_v61  ;;  %v858_v3 = vadd.f32 %v2118_v38, %v857_v1  ;;  %1652 = vmatmul.mubr.msk.bf16.vlgmr.msra.gmra.mrb[16].mxu0 %vm541_vm0, %v951_v55  ;;  %vm905_vm7 = vcmp.gt.f32.partialorder %v855_v61, 0.0 }
 0x202   : > { %vm908_vm8 = vcmp.gt.f32.partialorder %v866_v0, 0.0  ;;  %v925_v4 = vmul.f32 %v2120_v40, %v866_v0  ;;  %v940_v6 = vsel %vm907_vm6, %v863_v59, %v924_v63  ;;  %vm1214_vm6 = vcmask 261120  }
 0x203   : > { %vm906_vm9 = vcmp.gt.f32.partialorder %v858_v3, 0.0  ;;  %v923_v5 = vmul.f32 %v2120_v40, %v858_v3  ;;  %v938_v8 = vsel %vm905_vm7, %v855_v61, %v922_v2 }
 0x204   : > { %v941_v7 = vsel %vm908_vm8, %v866_v0, %v925_v4 }
 0x205   : > { %v953_v9 = vpack.c.bf16 %v941_v7, %v940_v6  ;;  %v939_v10 = vsel %vm906_vm9, %v858_v3, %v923_v5  ;;  %v1633_v11 = vpop.f32.mrb[8].mxu1 }
 0x206   : > { %v952_v12 = vpack.c.bf16 %v939_v10, %v938_v8  ;;  %v879_v13 = vadd.f32 %v1633_v11, %v2118_v38  ;;  %v870_v14 = vpop.f32.mrb[9].mxu1 }
 0x207   : > { %v871_v15 = vadd.f32 %v2118_v38, %v870_v14  ;;  %v1634_v16 = vpop.f32.mrb[10].mxu1 }
 0x208   : > { %v928_v17 = vmul.f32 %v2120_v40, %v879_v13  ;;  %v882_v18 = vadd.f32 %v1634_v16, %v2118_v38  ;;  %v873_v19 = vpop.f32.mrb[11].mxu1  ;;  %1655 = vmatprep.mubr.msk.bf16.mxu0 %vm541_vm0, %v952_v12  ;;  %vm911_vm10 = vcmp.gt.f32.partialorder %v879_v13, 0.0 }
 0x209   : > { %v926_v20 = vmul.f32 %v2120_v40, %v871_v15  ;;  %v874_v21 = vadd.f32 %v2118_v38, %v873_v19  ;;  %1656 = vmatmul.mubr.msk.bf16.gmra.mrb[20].mxu0 %vm541_vm0, %v953_v9  ;;  %vm909_vm11 = vcmp.gt.f32.partialorder %v871_v15, 0.0 }
 0x20a   : > { %vm912_vm12 = vcmp.gt.f32.partialorder %v882_v18, 0.0  ;;  %v929_v22 = vmul.f32 %v2120_v40, %v882_v18  ;;  %v944_v26 = vsel %vm911_vm10, %v879_v13, %v928_v17 }
 0x20b   : > { %vm910_vm13 = vcmp.gt.f32.partialorder %v874_v21, 0.0  ;;  %v927_v23 = vmul.f32 %v2120_v40, %v874_v21  ;;  %v942_v28 = vsel %vm909_vm11, %v871_v15, %v926_v20 }
 0x20c   : > { %v945_v27 = vsel %vm912_vm12, %v882_v18, %v929_v22 }
 0x20d   : > { %v955_v29 = vpack.c.bf16 %v945_v27, %v944_v26  ;;  %v943_v30 = vsel %vm910_vm13, %v874_v21, %v927_v23  ;;  %v1637_v31 = vpop.f32.mrb[12].mxu1 }
 0x20e   : > { %v954_v32 = vpack.c.bf16 %v943_v30, %v942_v28  ;;  %v895_v33 = vadd.f32 %v1637_v31, %v2118_v38  ;;  %v886_v34 = vpop.f32.mrb[13].mxu1 }
 0x20f   : > { %v887_v35 = vadd.f32 %v2118_v38, %v886_v34  ;;  %v1638_v24 = vpop.f32.mrb[14].mxu1 }
 0x210   : > { %v932_v25 = vmul.f32 %v2120_v40, %v895_v33  ;;  %v898_v36 = vadd.f32 %v1638_v24, %v2118_v38  ;;  %v889_v37 = vpop.f32.mrb[15].mxu1  ;;  %1659 = vmatprep.mubr.msk.bf16.mxu0 %vm541_vm0, %v954_v32  ;;  %vm915_vm14 = vcmp.gt.f32.partialorder %v895_v33, 0.0 }
 0x211   : > { %v930_v39 = vmul.f32 %v2120_v40, %v887_v35  ;;  %v890_v41 = vadd.f32 %v2118_v38, %v889_v37  ;;  %1660 = vmatmul.mubr.msk.bf16.gmra.mrb[24].mxu0 %vm541_vm0, %v955_v29  ;;  %vm913_vm15 = vcmp.gt.f32.partialorder %v887_v35, 0.0  ;;  %v2165_v38 = vld [vmem:[%s2304_s8] ss:$0 sm:$0xff] }
 0x212   : > { %vm916_vm1 = vcmp.gt.f32.partialorder %v898_v36, 0.0  ;;  %v933_v42 = vmul.f32 %v2120_v40, %v898_v36  ;;  %v948_v44 = vsel %vm915_vm14, %v895_v33, %v932_v25 }
 0x213   : > { %vm914_vm2 = vcmp.gt.f32.partialorder %v890_v41, 0.0  ;;  %v931_v43 = vmul.f32 %v2120_v40, %v890_v41  ;;  %v946_v46 = vsel %vm913_vm15, %v887_v35, %v930_v39 }
 0x214   : > { %v949_v45 = vsel %vm916_vm1, %v898_v36, %v933_v42 }
 0x215   : > { %v957_v47 = vpack.c.bf16 %v949_v45, %v948_v44  ;;  %v947_v48 = vsel %vm914_vm2, %v890_v41, %v931_v43 }
 0x216   : > { %v956_v49 = vpack.c.bf16 %v947_v48, %v946_v46 }
 0x218   : > { %1663 = vmatprep.mubr.msk.bf16.mxu0 %vm541_vm0, %v956_v49 }
 0x219   : > { %1664 = vmatmul.mubr.msk.bf16.gmra.mrb[28].mxu0 %vm541_vm0, %v957_v47 }
 0x2d4   : > { %v1653_v50 = vpop.f32.mrb[16].mxu0 }
 0x2d5   : > { %v1080_v40 = vadd.f32 %v1653_v50, %v2165_v38  ;;  %v1071_v52 = vpop.f32.mrb[17].mxu0 }
 0x2d6   : > { %v1072_v53 = vadd.f32 %v2165_v38, %v1071_v52  ;;  %v1654_v54 = vpop.f32.mrb[18].mxu0 }
 0x2d7   : > { %v1153_v55 = vmul.f32 %v2167_v51, %v1080_v40  ;;  %v1083_v56 = vadd.f32 %v1654_v54, %v2165_v38  ;;  %v1074_v57 = vpop.f32.mrb[19].mxu0  ;;  %vm1136_vm0 = vcmp.gt.f32.partialorder %v1080_v40, 0.0 }
 0x2d8   : > { %v1151_v58 = vmul.f32 %v2167_v51, %v1072_v53  ;;  %v1075_v59 = vadd.f32 %v2165_v38, %v1074_v57  ;;  %vm1134_vm3 = vcmp.gt.f32.partialorder %v1072_v53, 0.0 }
 0x2d9   : > { %vm1137_vm4 = vcmp.gt.f32.partialorder %v1083_v56, 0.0  ;;  %v1154_v60 = vmul.f32 %v2167_v51, %v1083_v56  ;;  %v1169_v62 = vsel %vm1136_vm0, %v1080_v40, %v1153_v55 }
 0x2da   : > { %vm1135_vm5 = vcmp.gt.f32.partialorder %v1075_v59, 0.0  ;;  %v1152_v61 = vmul.f32 %v2167_v51, %v1075_v59  ;;  %v1167_v0 = vsel %vm1134_vm3, %v1072_v53, %v1151_v58 }
 0x2db   : > { %v1170_v63 = vsel %vm1137_vm4, %v1083_v56, %v1154_v60 }
 0x2dc   : > { %v1184_v1 = vpack.c.bf16 %v1170_v63, %v1169_v62  ;;  %v1168_v2 = vsel %vm1135_vm5, %v1075_v59, %v1152_v61  ;;  %v1657_v3 = vpop.f32.mrb[20].mxu0 }
 0x2dd   : > { %v1183_v4 = vpack.c.bf16 %v1168_v2, %v1167_v0  ;;  %v1096_v5 = vadd.f32 %v1657_v3, %v2165_v38  ;;  %v1087_v6 = vpop.f32.mrb[21].mxu0 }
 0x2de   : > { %v1088_v7 = vadd.f32 %v2165_v38, %v1087_v6  ;;  %v1658_v8 = vpop.f32.mrb[22].mxu0 }
 0x2df   : > { %v1157_v9 = vmul.f32 %v2167_v51, %v1096_v5  ;;  %v1099_v10 = vadd.f32 %v1658_v8, %v2165_v38  ;;  %v1090_v11 = vpop.f32.mrb[23].mxu0  ;;  %1671 = vmatprep.mubr.msk.bf16.mxu1 %vm1214_vm6, %v1183_v4  ;;  %vm1140_vm7 = vcmp.gt.f32.partialorder %v1096_v5, 0.0 }
 0x2e0   : > { %v1155_v12 = vmul.f32 %v2167_v51, %v1088_v7  ;;  %v1091_v13 = vadd.f32 %v2165_v38, %v1090_v11  ;;  %1672 = vmatmul.mubr.msk.bf16.vlgmr.msra.gmra.mrb[16].mxu1 %vm1214_vm6, %v1184_v1  ;;  %vm1138_vm8 = vcmp.gt.f32.partialorder %v1088_v7, 0.0 }
 0x2e1   : > { %vm1141_vm9 = vcmp.gt.f32.partialorder %v1099_v10, 0.0  ;;  %v1158_v14 = vmul.f32 %v2167_v51, %v1099_v10  ;;  %v1173_v16 = vsel %vm1140_vm7, %v1096_v5, %v1157_v9 }
 0x2e2   : > { %vm1139_vm10 = vcmp.gt.f32.partialorder %v1091_v13, 0.0  ;;  %v1156_v15 = vmul.f32 %v2167_v51, %v1091_v13  ;;  %v1171_v18 = vsel %vm1138_vm8, %v1088_v7, %v1155_v12 }
 0x2e3   : > { %v1174_v17 = vsel %vm1141_vm9, %v1099_v10, %v1158_v14 }
 0x2e4   : > { %v1186_v19 = vpack.c.bf16 %v1174_v17, %v1173_v16  ;;  %v1172_v20 = vsel %vm1139_vm10, %v1091_v13, %v1156_v15  ;;  %v1661_v21 = vpop.f32.mrb[24].mxu0 }
 0x2e5   : > { %v1185_v22 = vpack.c.bf16 %v1172_v20, %v1171_v18  ;;  %v1112_v23 = vadd.f32 %v1661_v21, %v2165_v38  ;;  %v1103_v26 = vpop.f32.mrb[25].mxu0 }
 0x2e6   : > { %v1104_v27 = vadd.f32 %v2165_v38, %v1103_v26  ;;  %v1662_v28 = vpop.f32.mrb[26].mxu0 }
 0x2e7   : > { %v1161_v29 = vmul.f32 %v2167_v51, %v1112_v23  ;;  %v1115_v30 = vadd.f32 %v1662_v28, %v2165_v38  ;;  %v1106_v31 = vpop.f32.mrb[27].mxu0  ;;  %1675 = vmatprep.mubr.msk.bf16.mxu1 %vm1214_vm6, %v1185_v22  ;;  %vm1144_vm11 = vcmp.gt.f32.partialorder %v1112_v23, 0.0 }
 0x2e8   : > { %v1159_v32 = vmul.f32 %v2167_v51, %v1104_v27  ;;  %v1107_v33 = vadd.f32 %v2165_v38, %v1106_v31  ;;  %1676 = vmatmul.mubr.msk.bf16.gmra.mrb[20].mxu1 %vm1214_vm6, %v1186_v19  ;;  %vm1142_vm12 = vcmp.gt.f32.partialorder %v1104_v27, 0.0 }
 0x2e9   : > { %vm1145_vm13 = vcmp.gt.f32.partialorder %v1115_v30, 0.0  ;;  %v1162_v34 = vmul.f32 %v2167_v51, %v1115_v30  ;;  %v1177_v24 = vsel %vm1144_vm11, %v1112_v23, %v1161_v29 }
 0x2ea   : > { %vm1143_vm14 = vcmp.gt.f32.partialorder %v1107_v33, 0.0  ;;  %v1160_v35 = vmul.f32 %v2167_v51, %v1107_v33  ;;  %v1175_v36 = vsel %vm1142_vm12, %v1104_v27, %v1159_v32 }
 0x2eb   : > { %v1178_v25 = vsel %vm1145_vm13, %v1115_v30, %v1162_v34 }
 0x2ec   : > { %v1188_v37 = vpack.c.bf16 %v1178_v25, %v1177_v24  ;;  %v1176_v39 = vsel %vm1143_vm14, %v1107_v33, %v1160_v35  ;;  %v1665_v41 = vpop.f32.mrb[28].mxu0 }
 0x2ed   : > { %v1187_v42 = vpack.c.bf16 %v1176_v39, %v1175_v36  ;;  %v1128_v43 = vadd.f32 %v1665_v41, %v2165_v38  ;;  %v1119_v44 = vpop.f32.mrb[29].mxu0 }
 0x2ee   : > { %v1120_v45 = vadd.f32 %v2165_v38, %v1119_v44  ;;  %v1666_v46 = vpop.f32.mrb[30].mxu0 }
 0x2ef   : > { %v1165_v47 = vmul.f32 %v2167_v51, %v1128_v43  ;;  %v1131_v48 = vadd.f32 %v1666_v46, %v2165_v38  ;;  %v1122_v49 = vpop.f32.mrb[31].mxu0  ;;  %1679 = vmatprep.mubr.msk.bf16.mxu1 %vm1214_vm6, %v1187_v42  ;;  %vm1148_vm15 = vcmp.gt.f32.partialorder %v1128_v43, 0.0 }
 0x2f0   : > { %v1163_v50 = vmul.f32 %v2167_v51, %v1120_v45  ;;  %v1123_v40 = vadd.f32 %v2165_v38, %v1122_v49  ;;  %1680 = vmatmul.mubr.msk.bf16.gmra.mrb[24].mxu1 %vm1214_vm6, %v1188_v37  ;;  %vm1146_vm1 = vcmp.gt.f32.partialorder %v1120_v45, 0.0  ;;  %v1510_v38 = vld [vmem:[%s2306_s10] ss:$0 sm:$0xff] }
 0x2f1   : > { %vm1149_vm2 = vcmp.gt.f32.partialorder %v1131_v48, 0.0  ;;  %v1166_v52 = vmul.f32 %v2167_v51, %v1131_v48  ;;  %v1181_v54 = vsel %vm1148_vm15, %v1128_v43, %v1165_v47 }
 0x2f2   : > { %vm1147_vm0 = vcmp.gt.f32.partialorder %v1123_v40, 0.0  ;;  %v1164_v53 = vmul.f32 %v2167_v51, %v1123_v40  ;;  %v1179_v56 = vsel %vm1146_vm1, %v1120_v45, %v1163_v50 }
 0x2f3   : > { %v1182_v55 = vsel %vm1149_vm2, %v1131_v48, %v1166_v52 }
 0x2f4   : > { %v1190_v57 = vpack.c.bf16 %v1182_v55, %v1181_v54  ;;  %v1180_v58 = vsel %vm1147_vm0, %v1123_v40, %v1164_v53 }
 0x2f5   : > { %v1189_v59 = vpack.c.bf16 %v1180_v58, %v1179_v56 }
 0x2f7   : > { %1683 = vmatprep.mubr.msk.bf16.mxu1 %vm1214_vm6, %v1189_v59 }
 0x2f8   : > { %1684 = vmatmul.mubr.msk.bf16.gmra.mrb[28].mxu1 %vm1214_vm6, %v1190_v57 }
 0x3b3   : > { %v1673_v60 = vpop.f32.mrb[16].mxu1 }
 0x3b4   : > { %v1282_v61 = vadd.f32 %v1673_v60, %v1510_v38  ;;  %v1273_v51 = vpop.f32.mrb[17].mxu1 }
 0x3b5   : > { %v1274_v62 = vadd.f32 %v1510_v38, %v1273_v51  ;;  %v1674_v63 = vpop.f32.mrb[18].mxu1 }
 0x3b6   : > { %1338 = vst [vmem:[%s2215_s12 + $0x10] sm:$0xff] %v1282_v61  ;;  %v1285_v0 = vadd.f32 %v1674_v63, %v1510_v38  ;;  %v1276_v1 = vpop.f32.mrb[19].mxu1 }
 0x3b7   : > { %1336 = vst [vmem:[%s2215_s12] sm:$0xff] %v1274_v62  ;;  %v1277_v2 = vadd.f32 %v1510_v38, %v1276_v1 }
 0x3b8   : > { %1339 = vst [vmem:[%s2215_s12 + $0x18] sm:$0xff] %v1285_v0 }
 0x3b9   : > { %1337 = vst [vmem:[%s2215_s12 + $0x8] sm:$0xff] %v1277_v2 }
 0x3bb   : > { %v1677_v3 = vpop.f32.mrb[20].mxu1 }
 0x3bc   : > { %v1298_v4 = vadd.f32 %v1677_v3, %v1510_v38  ;;  %v1289_v5 = vpop.f32.mrb[21].mxu1 }
 0x3bd   : > { %v1290_v6 = vadd.f32 %v1510_v38, %v1289_v5  ;;  %v1678_v7 = vpop.f32.mrb[22].mxu1 }
 0x3be   : > { %1342 = vst [vmem:[%s2215_s12 + $0x30] sm:$0xff] %v1298_v4  ;;  %v1301_v8 = vadd.f32 %v1678_v7, %v1510_v38  ;;  %v1292_v9 = vpop.f32.mrb[23].mxu1 }
 0x3bf   : > { %1340 = vst [vmem:[%s2215_s12 + $0x20] sm:$0xff] %v1290_v6  ;;  %v1293_v10 = vadd.f32 %v1510_v38, %v1292_v9 }
 0x3c0   : > { %1343 = vst [vmem:[%s2215_s12 + $0x38] sm:$0xff] %v1301_v8 }
 0x3c1   : > { %1341 = vst [vmem:[%s2215_s12 + $0x28] sm:$0xff] %v1293_v10 }
 0x3c3   : > { %v1681_v11 = vpop.f32.mrb[24].mxu1 }
 0x3c4   : > { %v1314_v12 = vadd.f32 %v1681_v11, %v1510_v38  ;;  %v1305_v13 = vpop.f32.mrb[25].mxu1 }
 0x3c5   : > { %v1306_v14 = vadd.f32 %v1510_v38, %v1305_v13  ;;  %v1682_v15 = vpop.f32.mrb[26].mxu1 }
 0x3c6   : > { %1346 = vst [vmem:[%s2215_s12 + $0x50] sm:$0xff] %v1314_v12  ;;  %v1317_v16 = vadd.f32 %v1682_v15, %v1510_v38  ;;  %v1308_v17 = vpop.f32.mrb[27].mxu1 }
 0x3c7   : > { %1344 = vst [vmem:[%s2215_s12 + $0x40] sm:$0xff] %v1306_v14  ;;  %v1309_v18 = vadd.f32 %v1510_v38, %v1308_v17 }
 0x3c8   : > { %1347 = vst [vmem:[%s2215_s12 + $0x58] sm:$0xff] %v1317_v16 }
 0x3c9   : > { %1345 = vst [vmem:[%s2215_s12 + $0x48] sm:$0xff] %v1309_v18 }
 0x3cb   : > { %v1685_v19 = vpop.f32.mrb[28].mxu1  ;;  %1359 = sbr.rel (!%p1951_p5) target bundleno = 1006 (0x3ee), region = 72 }
 0x3cc   : > { %v1330_v20 = vadd.f32 %v1685_v19, %v1510_v38  ;;  %v1321_v21 = vpop.f32.mrb[29].mxu1 }
 0x3cd   : > { %v1322_v22 = vadd.f32 %v1510_v38, %v1321_v21  ;;  %v1686_v23 = vpop.f32.mrb[30].mxu1 }
 0x3ce   : > { %1350 = vst [vmem:[%s2215_s12 + $0x70] sm:$0xff] %v1330_v20  ;;  %v1333_v26 = vadd.f32 %v1686_v23, %v1510_v38  ;;  %v1324_v27 = vpop.f32.mrb[31].mxu1 }
 0x3cf   : > { %1348 = vst [vmem:[%s2215_s12 + $0x60] sm:$0xff] %v1322_v22  ;;  %v1325_v28 = vadd.f32 %v1510_v38, %v1324_v27 }
 0x3d0   : > { %1351 = vst [vmem:[%s2215_s12 + $0x78] sm:$0xff] %v1333_v26 }
 0x3d1   : > { %1349 = vst [vmem:[%s2215_s12 + $0x68] sm:$0xff] %v1325_v28 }
 0x3d2   : > { %s2320_s14 = smov (!%p1362_p9, %s1361_s14), 16 }
 0x3d3   : > { %s2240_s22 = sshll.u32 %s2320_s14, 7 }
 0x3d4   : > { %s1366_s0 = ssub.s32 2048, %s2240_s22 }
 0x3d5   : > { %1367 = vsyncadd %s2235_s13, %s1366_s0  ;;  %p1524_p11 = scmp.ne.s32.totalorder %s2240_s22, 0  ;;  %s1530_s26 = sshll.u32 %s1934_s21, 11 }
 0x3d6   : > { %s2249_s16 = scalar_lea.hbm %s2307_s11, %s1530_s26  ;;  %s1372_s24 = sshll.u32 %s2215_s12, 4  ;;  %s2252_s24 = int_to_ptr.vmem [resolvable:$true] %s1372_s24 }
 0x3d7   : > { %s1781_s25 = scalar_lea.vmem %s2252_s24, %s2240_s22  ;;  %s1850_s30 = smov [#allocation5]  }
 0x3d8   : > { %p1782_p5 = scmp.ne.s32.totalorder %s2252_s24, %s1781_s25  ;;  %s1785_s29 = sshll.u32 %s1850_s30, 4  ;;  %s1786_s29 = int_to_ptr.vmem [resolvable:$false] %s1785_s29 }
 0x3d9   : > { %s1787_s21 = scalar_lea.vmem %s1786_s29, 4096  ;;  %p1788_p0 = scmp.lt.s32.totalorder %s2252_s24, %s1786_s29 }
 0x3da   : > { %p1783_p12 = pnand %p1782_p5, %p1524_p11  ;;  %p1789_p1 = scmp.lt.s32.totalorder %s1787_s21, %s1781_s25 }
 0x3dc   : > { %p1784_p13 = pneg %p1783_p12  ;;  %p1790_p2 = por %p1789_p1, %p1788_p0 }
 0x3de   : > { %p1791_p3 = pnand %p1790_p2, %p1784_p13 }
 0x3e0   : > { %1794 = shalt.err (!%p1791_p3)
}
 0x3e1   : > { %s1795_s12 = scalar_lea.hbm %s2249_s16, %s2240_s22  ;;  %s1799_s26 = scalar_lea.hbm %s2307_s11, 6400 }
 0x3e2   : > { %p1796_p4 = scmp.ne.s32.totalorder %s2249_s16, %s1795_s12  ;;  %p1800_p10 = scmp.lt.u32.totalorder %s2249_s16, %s2307_s11 }
 0x3e3   : > { %p1801_p9 = scmp.lt.u32.totalorder %s1799_s26, %s1795_s12  ;;  %p1803_p12 = scmp.lt.u32.totalorder %s1795_s12, %s2249_s16 }
 0x3e4   : > { %p1797_p7 = pnand %p1796_p4, %p1524_p11 }
 0x3e5   : > { %p1802_p5 = por %p1801_p9, %p1800_p10 }
 0x3e6   : > { %p1798_p8 = pneg %p1797_p7 }
 0x3e7   : > { %p1804_p13 = por %p1803_p12, %p1802_p5 }
 0x3e9   : > { %p1805_p0 = pnand %p1804_p13, %p1798_p8 }
 0x3eb   : > { %1808 = shalt.err (!%p1805_p0)
}
 0x3ec   : > { %s1851_s25 = smov 128   ;;  %s1852_s30 = smov 8  }
 0x3ed   : > { %1378 = dma.vmem_to_hbm [thread:$0]  (%p1524_p11), %s2252_s24, %s2240_s22, %s2249_s16, %s2235_s13, %s1851_s25, %s1851_s25, %s1852_s30  }
 0x3ee PF: > { %p1702_p1 = scmp.ge.s32.totalorder %s1847_s20, 2  ;;  %s1387_s29 = sand.u32 1, %s1835_s17  }
 0x3ef   : > { %s1388_s21 = scalar_lea.sflag [#allocation3], %s1387_s29 }
 0x3f0   : > { %p1697_p2 = pnand %p1702_p1, %p1955_p6 }
 0x3f2   : > { %1830 = dma.done.wait (!%p1697_p2), %s1388_s21, 2048  }
 0x3f3   : > { %1832 = vsyncadd (!%p1697_p2), %s1388_s21, 4294965248  ;;  %s2314_s12 = sld [smem:[#allocation8_spill]]  ;;  %p22_p3 = scmp.ge.s32.totalorder %s1938_s23, 6  }
 0x3f4   : > { %s2315_s17 = smov %s1839_s18  ;;  %s2316_s18 = smov %s1843_s19 }
 0x3f5   : > { %s2318_s20 = smov %s1938_s23  ;;  %24 = sbr.rel (!%p22_p3) target bundleno = 6 (0x6), region = 104 }
 0x3f9   : > { %s2317_s19 = smov %s2314_s12 }
 0x3fc   :  { %1393 = vsyncpa [#allocation3], 1 }
 0x3fd   :  { %1395 = vsyncpa [#allocation3 + $0x1], 1 }
 0x3fe   :  { %1396 = vsyncpa [#allocation4], 1 }
 0x3ff   :  { %1398 = vsyncpa [#allocation4 + $0x1], 1 }

// kernel: tpu_custom_call.1
= control target key start
LH: loop header
LB: loop body
LE: loop exit
PB: predicated region body
PF: predicated region fallthrough
CT: control target
= control target key end

     0   :  { %s2296_s0 = inlined_call_operand.vmem [shape: f32[2], index: 0, kind: input, shape index: {}]   ;;  %s2297_s1 = inlined_call_operand.vmem [shape: f32[1,96], index: 1, kind: input, shape index: {}]   ;;  %s2298_s2 = inlined_call_operand.vmem [shape: bf16[400,96], index: 2, kind: input, shape index: {}]   ;;  %s2299_s3 = inlined_call_operand.vmem [shape: bf16[96,96], index: 3, kind: input, shape index: {}]   ;;  %s2300_s4 = inlined_call_operand.vmem [shape: f32[1,96], index: 4, kind: input, shape index: {}]   ;;  %s2301_s5 = inlined_call_operand.vmem [shape: bf16[96,96], index: 5, kind: input, shape index: {}]   ;;  %s2302_s6 = inlined_call_operand.vmem [shape: f32[1,96], index: 6, kind: input, shape index: {}]   ;;  %s2303_s7 = inlined_call_operand.vmem [shape: bf16[96,32], index: 7, kind: input, shape index: {}]   ;;  %s2304_s8 = inlined_call_operand.vmem [shape: f32[1,32], index: 8, kind: input, shape index: {}]   ;;  %s2305_s9 = inlined_call_operand.vmem [shape: bf16[32,128], index: 9, kind: input, shape index: {}]   ;;  %s2306_s10 = inlined_call_operand.vmem [shape: f32[1,128], index: 10, kind: input, shape index: {}]   ;;  %s2307_s11 = inlined_call_operand.hbm [shape: f32[400,128], index: 11, kind: output, shape index: {}]  }
   0x1   :  { %2308 = sst [smem:[#allocation9_spill]] %s2296_s0 }
   0x2   :  { %16 = vsyncpa [#allocation4], 0 }
   0x3   :  { %17 = vsyncpa [#allocation3], 0 }
   0x4   :  { %19 = vsyncpa [#allocation3 + $0x1], 0  ;;  %s1913_s17 = smov 0   ;;  %s1915_s18 = smov 0  }
   0x5   :  { %s1917_s19 = smov 0   ;;  %s1919_s20 = smov 0  }
   0x6 LB: > { %s1934_s21 = sadd.s32 4294967295, %s1847_s20   ;;  %s1446_s22 = sadd.s32 4294967294, %s1847_s20   ;;  %s1847_s20 = sphi %s1919_s20, %s2318_s20   ;;  %s1843_s19 = sphi %s1917_s19, %s2317_s19   ;;  %s1839_s18 = sphi %s1915_s18, %s2316_s18   ;;  %s1835_s17 = sphi %s1913_s17, %s2315_s17  }
   0x7   : > { %s1938_s23 = sadd.s32 1, %s1847_s20   ;;  %s268_s24 = sadd.s32 1, %s1843_s19 }
   0x8   : > { %s265_s25 = ssub.s32 %s1847_s20, %s1938_s23  ;;  %p278_p0 = scmp.ne.s32.totalorder %s1843_s19, %s1839_s18 }
   0x9   : > { %p266_p1 = scmp.eq.s32.totalorder %s265_s25, 0  ;;  %p279_p2 = scmp.eq.s32.totalorder %s1934_s21, 3 }
   0xa   : > { %p284_p3 = scmp.ne.s32.totalorder %s1839_s18, %s1835_s17  ;;  %p285_p4 = scmp.eq.s32.totalorder %s1446_s22, 3 }
   0xb   : > { %s1949_s26 = scalar_select %p266_p1, %s1843_s19, %s268_s24  }
   0xc   : > { %p1951_p5 = por %p279_p2, %p278_p0  ;;  %p1955_p6 = por %p285_p4, %p284_p3 }
   0xd   : > { %2309 = sst [smem:[#allocation8_spill]] %s1949_s26  ;;  %p1447_p7 = scmp.ge.s32.totalorder %s1847_s20, 1 }
   0xe   : > { %p292_p8 = scmp.lt.s32.totalorder %s1847_s20, 5  ;;  %p1700_p9 = scmp.eq.s32.totalorder %s1934_s21, 0 }
   0xf   : > { %s2313_s0 = sld [smem:[#allocation9_spill]] }
  0x10   : > { %p1962_p10 = pnand %p1447_p7, %p292_p8 }
  0x12   : > { %p1692_p11 = pneg %p1962_p10 }
  0x14   : > { %p1693_p12 = pnand %p1700_p9, %p1692_p11 }
  0x15   : > { %s305_s13 = sshll.u32 %s2313_s0, 4  ;;  %s306_s13 = int_to_ptr.vmem [resolvable:$true] %s305_s13 }
  0x16   : > { %s1766_s14 = scalar_lea.vmem %s306_s13, 16  ;;  %p1768_p0 = pneg %p1693_p12 }
  0x17   : > { %p1767_p13 = scmp.ne.s32.totalorder %s306_s13, %s1766_s14  ;;  %p1774_p3 = scmp.lt.s32.totalorder %s306_s13, %s306_s13 }
  0x18   : > { %p1775_p4 = scmp.lt.s32.totalorder %s1766_s14, %s1766_s14 }
  0x19   : > { %p1769_p1 = pnand %p1768_p0, %p1767_p13 }
  0x1a   : > { %p1776_p7 = por %p1775_p4, %p1774_p3 }
  0x1b   : > { %p1770_p2 = pneg %p1769_p1 }
  0x1d   : > { %p1777_p8 = pnand %p1776_p7, %p1770_p2 }
  0x1f   : > { %1780 = shalt.err (!%p1777_p8)
}
  0x20   : > { %s1849_s15 = smov [#allocation2]   ;;  %362 = sbr.rel (%p1962_p10) target bundleno = 1006 (0x3ee), region = 64 }
  0x21   : > { %1695 = dma.vmem_to_smem (!%p1693_p12), %s306_s13, 16, %s1849_s15, [#allocation4]  }
  0x27   : > { %1826 = dma.done.wait (%p1700_p9), [#allocation4], 16  }
  0x28   : > { %1828 = vsyncadd (%p1700_p9), [#allocation4], 4294967280 }
  0x29   : > { %368 = sfence }
  0x2a   : > { %v1738_v0 = vld [vmem:[%s2299_s3] sm:$0xff]   ;;  %s1983_s24 = sshll.u32 %s1934_s21, 4  ;;  %v1739_v1 = vld [vmem:[%s2299_s3 + $0x8] sm:$0xff]   ;;  %v1740_v2 = vld [vmem:[%s2299_s3 + $0x10] sm:$0xff]   ;;  %vm541_vm0 = vcmask 785408   ;;  %s1455_s13 = sld [smem:[#allocation2 + $0x1]] }
  0x2b   : > { %p412_p10 = scmp.lt.s32.totalorder %s1983_s24, 49  ;;  %1583 = vmatprep.subr.bf16.mxu0 %v1738_v0  ;;  %v1752_v3 = vld [vmem:[%s2301_s5] sm:$0xff]   ;;  %v1741_v5 = vld [vmem:[%s2299_s3 + $0x18] sm:$0xff]   ;;  %v1743_v7 = vld [vmem:[%s2299_s3 + $0x28] sm:$0xff]   ;;  %s427_s0 = sld [smem:[#allocation2]] }
  0x2c   : > { %1584 = vmatpush3.bf16.msra.mxu0 %v1738_v0  ;;  %1611 = vmatprep.subr.bf16.mxu1 %v1752_v3  ;;  %v1742_v6 = vld [vmem:[%s2299_s3 + $0x20] sm:$0xff]   ;;  %v1753_v8 = vld [vmem:[%s2301_s5 + $0x8] sm:$0xff]   ;;  %v1754_v9 = vld [vmem:[%s2301_s5 + $0x10] sm:$0xff]   ;;  %s404_s16 = sand.u32 1, %s1839_s18  }
  0x2d   : > { %s413_s29 = scalar_select %p412_p10, %s1983_s24, 49  ;;  %1585 = vmatprep.subr.bf16.mxu0 %v1739_v1  ;;  %1612 = vmatpush3.bf16.msra.mxu1 %v1752_v3  ;;  %v1755_v17 = vld [vmem:[%s2301_s5 + $0x18] sm:$0xff]   ;;  %v1756_v18 = vld [vmem:[%s2301_s5 + $0x20] sm:$0xff]   ;;  %v1757_v19 = vld [vmem:[%s2301_s5 + $0x28] sm:$0xff]  }
  0x2e   : > { %1613 = vmatprep.subr.bf16.mxu1 %v1753_v8  ;;  %v1758_v20 = vld [vmem:[%s2303_s7] sm:$0xff]   ;;  %v1759_v21 = vld [vmem:[%s2303_s7 + $0x8] sm:$0xff]   ;;  %v1760_v22 = vld [vmem:[%s2303_s7 + $0x10] sm:$0xff]   ;;  %s1452_s25 = sshll.u32 %s404_s16, 7 }
  0x2f   : > { %s1454_s14 = sshll.u32 %s413_s29, 2  ;;  %v1761_v23 = vld [vmem:[%s2303_s7 + $0x18] sm:$0xff]   ;;  %v2056_v24 = vld [vmem:[%s2300_s4] ss:$0 sm:$0xff]  ;;  %s2215_s12 = scalar_lea.vmem [#allocation5], %s1452_s25 }
  0x30   : > { %s1996_s22 = scalar_lea.vmem %s2298_s2, %s1454_s14  ;;  %1586 = vmatpush3.bf16.msra.mxu0 %v1739_v1  ;;  %v2061_v25 = vld [vmem:[%s2297_s1] ss:$0 sm:$0xff]  ;;  %s1361_s14 = ssub.s32 (%p1951_p5), 50, %s1983_s24 }
  0x31   : > { %v1744_v4 = vld [vmem:[%s1996_s22] sm:$0xff]   ;;  %1587 = vmatprep.subr.bf16.mxu0 %v1740_v2  ;;  %1614 = vmatpush3.bf16.msra.mxu1 %v1753_v8  ;;  %v1745_v10 = vld [vmem:[%s1996_s22 + $0x8] sm:$0xff]   ;;  %v1746_v11 = vld [vmem:[%s1996_s22 + $0x10] sm:$0xff]   ;;  %p1362_p9 = scmp.lt.s32.totalorder (%p1951_p5), %s1361_s14, 16 }
  0x32   : > { %1595 = vmatprep.mubr.msk.bf16.mxu0 %vm541_vm0, %v1744_v4  ;;  %1615 = vmatprep.subr.bf16.mxu1 %v1754_v9  ;;  %v1747_v12 = vld [vmem:[%s1996_s22 + $0x18] sm:$0xff]   ;;  %v1748_v13 = vld [vmem:[%s1996_s22 + $0x20] sm:$0xff]   ;;  %v1749_v14 = vld [vmem:[%s1996_s22 + $0x28] sm:$0xff]  }
  0x33   : > { %v1750_v15 = vld [vmem:[%s1996_s22 + $0x30] sm:$0xff]   ;;  %v1751_v16 = vld [vmem:[%s1996_s22 + $0x38] sm:$0xff]  }
  0x34   : > { %1588 = vmatpush3.bf16.msra.mxu0 %v1740_v2 }
  0x35   : > { %1589 = vmatprep.subr.bf16.mxu0 %v1741_v5  ;;  %1616 = vmatpush3.bf16.msra.mxu1 %v1754_v9 }
  0x36   : > { %1617 = vmatprep.subr.bf16.mxu1 %v1755_v17 }
  0x38   : > { %1590 = vmatpush3.bf16.msra.mxu0 %v1741_v5 }
  0x39   : > { %1591 = vmatprep.subr.bf16.mxu0 %v1742_v6  ;;  %1618 = vmatpush3.bf16.msra.mxu1 %v1755_v17 }
  0x3a   : > { %1619 = vmatprep.subr.bf16.mxu1 %v1756_v18 }
  0x3c   : > { %1592 = vmatpush3.bf16.msra.mxu0 %v1742_v6 }
  0x3d   : > { %1593 = vmatprep.subr.bf16.mxu0 %v1743_v7  ;;  %1620 = vmatpush3.bf16.msra.mxu1 %v1756_v18 }
  0x3e   : > { %1621 = vmatprep.subr.bf16.mxu1 %v1757_v19 }
  0x40   : > { %1594 = vmatpush3.bf16.msra.mxu0 %v1743_v7 }
  0x41   : > { %1622 = vmatpush3.bf16.msra.mxu1 %v1757_v19  ;;  %1639 = vmatprep.subr.bf16.mxu0 %v1758_v20 }
  0x43   : > { %1596 = vmatmul.mubr.msk.bf16.vlgmr.msra.gmra.mrb[0].mxu0 %vm541_vm0, %v1745_v10 }
  0x44   : > { %1599 = vmatprep.mubr.msk.bf16.mxu0 %vm541_vm0, %v1746_v11  ;;  %1640 = vmatpush3.bf16.msra.mxu0 %v1758_v20 }
  0x45   : > { %1641 = vmatprep.subr.bf16.mxu0 %v1759_v21 }
  0x48   : > { %1642 = vmatpush3.bf16.msra.mxu0 %v1759_v21 }
  0x49   : > { %1643 = vmatprep.subr.bf16.mxu0 %v1760_v22 }
  0x4b   : > { %1600 = vmatmul.mubr.msk.bf16.gmra.mrb[4].mxu0 %vm541_vm0, %v1747_v12 }
  0x4c   : > { %1603 = vmatprep.mubr.msk.bf16.mxu0 %vm541_vm0, %v1748_v13  ;;  %1644 = vmatpush3.bf16.msra.mxu0 %v1760_v22 }
  0x4d   : > { %1645 = vmatprep.subr.bf16.mxu0 %v1761_v23 }
  0x50   : > { %1646 = vmatpush3.bf16.msra.mxu0 %v1761_v23 }
  0x53   : > { %1604 = vmatmul.mubr.msk.bf16.gmra.mrb[8].mxu0 %vm541_vm0, %v1749_v14 }
  0x54   : > { %1607 = vmatprep.mubr.msk.bf16.mxu0 %vm541_vm0, %v1750_v15 }
  0x5b   : > { %1608 = vmatmul.mubr.msk.bf16.gmra.mrb[12].mxu0 %vm541_vm0, %v1751_v16 }
 0x116   : > { %v1597_v26 = vpop.f32.mrb[0].mxu0 }
 0x117   : > { %v609_v27 = vadd.f32 %v1597_v26, %v2056_v24  ;;  %v600_v28 = vpop.f32.mrb[1].mxu0 }
 0x118   : > { %v601_v29 = vadd.f32 %v2056_v24, %v600_v28  ;;  %v1598_v30 = vpop.f32.mrb[2].mxu0 }
 0x119   : > { %v687_v31 = vmul.f32 %v2061_v25, %v609_v27  ;;  %v612_v32 = vadd.f32 %v1598_v30, %v2056_v24  ;;  %v603_v33 = vpop.f32.mrb[3].mxu0  ;;  %vm665_vm1 = vcmp.gt.f32.partialorder %v609_v27, 0.0 }
 0x11a   : > { %v685_v34 = vmul.f32 %v2061_v25, %v601_v29  ;;  %v604_v35 = vadd.f32 %v2056_v24, %v603_v33  ;;  %vm663_vm3 = vcmp.gt.f32.partialorder %v601_v29, 0.0 }
 0x11b   : > { %vm666_vm2 = vcmp.gt.f32.partialorder %v612_v32, 0.0  ;;  %v688_v36 = vmul.f32 %v2061_v25, %v612_v32  ;;  %v703_v38 = vsel %vm665_vm1, %v609_v27, %v687_v31 }
 0x11c   : > { %v686_v37 = vmul.f32 %v2061_v25, %v604_v35  ;;  %vm664_vm4 = vcmp.gt.f32.partialorder %v604_v35, 0.0  ;;  %v701_v42 = vsel %vm663_vm3, %v601_v29, %v685_v34 }
 0x11d   : > { %v704_v39 = vsel %vm666_vm2, %v612_v32, %v688_v36  ;;  %v1764_v36 = vld [vmem:[%s2305_s9] sm:$0xff]  }
 0x11e   : > { %v718_v40 = vpack.c.bf16 %v704_v39, %v703_v38  ;;  %v1601_v41 = vpop.f32.mrb[4].mxu0  ;;  %v702_v43 = vsel %vm664_vm4, %v604_v35, %v686_v37  ;;  %v1765_v37 = vld [vmem:[%s2305_s9 + $0x8] sm:$0xff]   ;;  %1667 = vmatprep.subr.bf16.mxu1 %v1764_v36  ;;  %v2118_v38 = vld [vmem:[%s2302_s6] ss:$0 sm:$0xff] }
 0x11f   : > { %v625_v44 = vadd.f32 %v1601_v41, %v2056_v24  ;;  %v616_v45 = vpop.f32.mrb[5].mxu0  ;;  %v717_v46 = vpack.c.bf16 %v702_v43, %v701_v42 }
 0x120   : > { %v617_v47 = vadd.f32 %v2056_v24, %v616_v45  ;;  %v1602_v48 = vpop.f32.mrb[6].mxu0 }
 0x121   : > { %v691_v49 = vmul.f32 %v2061_v25, %v625_v44  ;;  %v628_v50 = vadd.f32 %v1602_v48, %v2056_v24  ;;  %v619_v51 = vpop.f32.mrb[7].mxu0  ;;  %1623 = vmatprep.mubr.msk.bf16.mxu1 %vm541_vm0, %v717_v46  ;;  %vm669_vm5 = vcmp.gt.f32.partialorder %v625_v44, 0.0 }
 0x122   : > { %v689_v52 = vmul.f32 %v2061_v25, %v617_v47  ;;  %v620_v53 = vadd.f32 %v2056_v24, %v619_v51  ;;  %1624 = vmatmul.mubr.msk.bf16.vlgmr.msra.gmra.mrb[0].mxu1 %vm541_vm0, %v718_v40  ;;  %vm667_vm6 = vcmp.gt.f32.partialorder %v617_v47, 0.0  ;;  %v2120_v40 = vstv %s1455_s13  ;;  %s2235_s13 = scalar_lea.sflag [#allocation3], %s404_s16 }
 0x123   : > { %vm670_vm7 = vcmp.gt.f32.partialorder %v628_v50, 0.0  ;;  %v692_v54 = vmul.f32 %v2061_v25, %v628_v50  ;;  %v707_v56 = vsel %vm669_vm5, %v625_v44, %v691_v49  ;;  %1668 = vmatpush3.bf16.msra.mxu1 %v1764_v36 }
 0x124   : > { %vm668_vm8 = vcmp.gt.f32.partialorder %v620_v53, 0.0  ;;  %v690_v55 = vmul.f32 %v2061_v25, %v620_v53  ;;  %v705_v58 = vsel %vm667_vm6, %v617_v47, %v689_v52  ;;  %1669 = vmatprep.subr.bf16.mxu1 %v1765_v37 }
 0x125   : > { %v708_v57 = vsel %vm670_vm7, %v628_v50, %v692_v54 }
 0x126   : > { %v720_v59 = vpack.c.bf16 %v708_v57, %v707_v56  ;;  %v706_v60 = vsel %vm668_vm8, %v620_v53, %v690_v55  ;;  %v1605_v61 = vpop.f32.mrb[8].mxu0 }
 0x127   : > { %v719_v62 = vpack.c.bf16 %v706_v60, %v705_v58  ;;  %v641_v63 = vadd.f32 %v1605_v61, %v2056_v24  ;;  %v632_v0 = vpop.f32.mrb[9].mxu0  ;;  %1670 = vmatpush3.bf16.msra.mxu1 %v1765_v37 }
 0x128   : > { %v633_v1 = vadd.f32 %v2056_v24, %v632_v0  ;;  %v1606_v2 = vpop.f32.mrb[10].mxu0 }
 0x129   : > { %v695_v3 = vmul.f32 %v2061_v25, %v641_v63  ;;  %v644_v4 = vadd.f32 %v1606_v2, %v2056_v24  ;;  %v635_v5 = vpop.f32.mrb[11].mxu0  ;;  %1627 = vmatprep.mubr.msk.bf16.mxu1 %vm541_vm0, %v719_v62  ;;  %vm673_vm9 = vcmp.gt.f32.partialorder %v641_v63, 0.0 }
 0x12a   : > { %v693_v6 = vmul.f32 %v2061_v25, %v633_v1  ;;  %v636_v7 = vadd.f32 %v2056_v24, %v635_v5  ;;  %1628 = vmatmul.mubr.msk.bf16.gmra.mrb[4].mxu1 %vm541_vm0, %v720_v59  ;;  %vm671_vm10 = vcmp.gt.f32.partialorder %v633_v1, 0.0 }
 0x12b   : > { %vm674_vm11 = vcmp.gt.f32.partialorder %v644_v4, 0.0  ;;  %v696_v8 = vmul.f32 %v2061_v25, %v644_v4  ;;  %v711_v10 = vsel %vm673_vm9, %v641_v63, %v695_v3 }
 0x12c   : > { %vm672_vm12 = vcmp.gt.f32.partialorder %v636_v7, 0.0  ;;  %v694_v9 = vmul.f32 %v2061_v25, %v636_v7  ;;  %v709_v12 = vsel %vm671_vm10, %v633_v1, %v693_v6 }
 0x12d   : > { %v712_v11 = vsel %vm674_vm11, %v644_v4, %v696_v8 }
 0x12e   : > { %v722_v13 = vpack.c.bf16 %v712_v11, %v711_v10  ;;  %v710_v14 = vsel %vm672_vm12, %v636_v7, %v694_v9  ;;  %v1609_v15 = vpop.f32.mrb[12].mxu0 }
 0x12f   : > { %v721_v16 = vpack.c.bf16 %v710_v14, %v709_v12  ;;  %v657_v17 = vadd.f32 %v1609_v15, %v2056_v24  ;;  %v648_v18 = vpop.f32.mrb[13].mxu0 }
 0x130   : > { %v649_v19 = vadd.f32 %v2056_v24, %v648_v18  ;;  %v1610_v20 = vpop.f32.mrb[14].mxu0 }
 0x131   : > { %v699_v21 = vmul.f32 %v2061_v25, %v657_v17  ;;  %v660_v22 = vadd.f32 %v1610_v20, %v2056_v24  ;;  %v651_v23 = vpop.f32.mrb[15].mxu0  ;;  %1631 = vmatprep.mubr.msk.bf16.mxu1 %vm541_vm0, %v721_v16  ;;  %vm677_vm13 = vcmp.gt.f32.partialorder %v657_v17, 0.0 }
 0x132   : > { %v697_v26 = vmul.f32 %v2061_v25, %v649_v19  ;;  %v652_v27 = vadd.f32 %v2056_v24, %v651_v23  ;;  %1632 = vmatmul.mubr.msk.bf16.gmra.mrb[8].mxu1 %vm541_vm0, %v722_v13  ;;  %vm675_vm14 = vcmp.gt.f32.partialorder %v649_v19, 0.0  ;;  %v1762_v24 = vld [vmem:[%s2303_s7 + $0x20] sm:$0xff]  }
 0x133   : > { %vm678_vm15 = vcmp.gt.f32.partialorder %v660_v22, 0.0  ;;  %v700_v28 = vmul.f32 %v2061_v25, %v660_v22  ;;  %v715_v30 = vsel %vm677_vm13, %v657_v17, %v699_v21  ;;  %1647 = vmatprep.subr.bf16.mxu0 %v1762_v24 }
 0x134   : > { %vm676_vm1 = vcmp.gt.f32.partialorder %v652_v27, 0.0  ;;  %v698_v29 = vmul.f32 %v2061_v25, %v652_v27  ;;  %v713_v32 = vsel %vm675_vm14, %v649_v19, %v697_v26  ;;  %1648 = vmatpush3.bf16.msra.mxu0 %v1762_v24  ;;  %v1763_v25 = vld [vmem:[%s2303_s7 + $0x28] sm:$0xff]  }
 0x135   : > { %v716_v31 = vsel %vm678_vm15, %v660_v22, %v700_v28  ;;  %1649 = vmatprep.subr.bf16.mxu0 %v1763_v25 }
 0x136   : > { %v724_v33 = vpack.c.bf16 %v716_v31, %v715_v30  ;;  %v714_v34 = vsel %vm676_vm1, %v652_v27, %v698_v29 }
 0x137   : > { %v723_v35 = vpack.c.bf16 %v714_v34, %v713_v32 }
 0x138   : > { %1650 = vmatpush3.bf16.msra.mxu0 %v1763_v25 }
 0x139   : > { %1635 = vmatprep.mubr.msk.bf16.mxu1 %vm541_vm0, %v723_v35 }
 0x13a   : > { %1636 = vmatmul.mubr.msk.bf16.gmra.mrb[12].mxu1 %vm541_vm0, %v724_v33 }
 0x1f5   : > { %v1625_v39 = vpop.f32.mrb[0].mxu1 }
 0x1f6   : > { %v847_v41 = vadd.f32 %v1625_v39, %v2118_v38  ;;  %v838_v42 = vpop.f32.mrb[1].mxu1 }
 0x1f7   : > { %v839_v43 = vadd.f32 %v2118_v38, %v838_v42  ;;  %v1626_v44 = vpop.f32.mrb[2].mxu1 }
 0x1f8   : > { %v920_v45 = vmul.f32 %v2120_v40, %v847_v41  ;;  %v850_v46 = vadd.f32 %v1626_v44, %v2118_v38  ;;  %v841_v47 = vpop.f32.mrb[3].mxu1  ;;  %vm903_vm2 = vcmp.gt.f32.partialorder %v847_v41, 0.0 }
 0x1f9   : > { %v918_v48 = vmul.f32 %v2120_v40, %v839_v43  ;;  %v842_v49 = vadd.f32 %v2118_v38, %v841_v47  ;;  %vm901_vm3 = vcmp.gt.f32.partialorder %v839_v43, 0.0 }
 0x1fa   : > { %vm904_vm4 = vcmp.gt.f32.partialorder %v850_v46, 0.0  ;;  %v921_v50 = vmul.f32 %v2120_v40, %v850_v46  ;;  %v936_v52 = vsel %vm903_vm2, %v847_v41, %v920_v45 }
 0x1fb   : > { %vm902_vm5 = vcmp.gt.f32.partialorder %v842_v49, 0.0  ;;  %v919_v51 = vmul.f32 %v2120_v40, %v842_v49  ;;  %v934_v54 = vsel %vm901_vm3, %v839_v43, %v918_v48 }
 0x1fc   : > { %v937_v53 = vsel %vm904_vm4, %v850_v46, %v921_v50 }
 0x1fd   : > { %v951_v55 = vpack.c.bf16 %v937_v53, %v936_v52  ;;  %v935_v56 = vsel %vm902_vm5, %v842_v49, %v919_v51  ;;  %v1629_v57 = vpop.f32.mrb[4].mxu1  ;;  %v2167_v51 = vstv %s427_s0 }
 0x1fe   : > { %v950_v58 = vpack.c.bf16 %v935_v56, %v934_v54  ;;  %v863_v59 = vadd.f32 %v1629_v57, %v2118_v38  ;;  %v854_v60 = vpop.f32.mrb[5].mxu1 }
 0x1ff   : > { %v855_v61 = vadd.f32 %v2118_v38, %v854_v60  ;;  %v1630_v62 = vpop.f32.mrb[6].mxu1 }
 0x200   : > { %v924_v63 = vmul.f32 %v2120_v40, %v863_v59  ;;  %v866_v0 = vadd.f32 %v1630_v62, %v2118_v38  ;;  %v857_v1 = vpop.f32.mrb[7].mxu1  ;;  %1651 = vmatprep.mubr.msk.bf16.mxu0 %vm541_vm0, %v950_v58  ;;  %vm907_vm6 = vcmp.gt.f32.partialorder %v863_v59, 0.0 }
 0x201   : > { %v922_v2 = vmul.f32 %v2120_v40, %v855_v61  ;;  %v858_v3 = vadd.f32 %v2118_v38, %v857_v1  ;;  %1652 = vmatmul.mubr.msk.bf16.vlgmr.msra.gmra.mrb[16].mxu0 %vm541_vm0, %v951_v55  ;;  %vm905_vm7 = vcmp.gt.f32.partialorder %v855_v61, 0.0 }
 0x202   : > { %vm908_vm8 = vcmp.gt.f32.partialorder %v866_v0, 0.0  ;;  %v925_v4 = vmul.f32 %v2120_v40, %v866_v0  ;;  %v940_v6 = vsel %vm907_vm6, %v863_v59, %v924_v63  ;;  %vm1214_vm6 = vcmask 261120  }
 0x203   : > { %vm906_vm9 = vcmp.gt.f32.partialorder %v858_v3, 0.0  ;;  %v923_v5 = vmul.f32 %v2120_v40, %v858_v3  ;;  %v938_v8 = vsel %vm905_vm7, %v855_v61, %v922_v2 }
 0x204   : > { %v941_v7 = vsel %vm908_vm8, %v866_v0, %v925_v4 }
 0x205   : > { %v953_v9 = vpack.c.bf16 %v941_v7, %v940_v6  ;;  %v939_v10 = vsel %vm906_vm9, %v858_v3, %v923_v5  ;;  %v1633_v11 = vpop.f32.mrb[8].mxu1 }
 0x206   : > { %v952_v12 = vpack.c.bf16 %v939_v10, %v938_v8  ;;  %v879_v13 = vadd.f32 %v1633_v11, %v2118_v38  ;;  %v870_v14 = vpop.f32.mrb[9].mxu1 }
 0x207   : > { %v871_v15 = vadd.f32 %v2118_v38, %v870_v14  ;;  %v1634_v16 = vpop.f32.mrb[10].mxu1 }
 0x208   : > { %v928_v17 = vmul.f32 %v2120_v40, %v879_v13  ;;  %v882_v18 = vadd.f32 %v1634_v16, %v2118_v38  ;;  %v873_v19 = vpop.f32.mrb[11].mxu1  ;;  %1655 = vmatprep.mubr.msk.bf16.mxu0 %vm541_vm0, %v952_v12  ;;  %vm911_vm10 = vcmp.gt.f32.partialorder %v879_v13, 0.0 }
 0x209   : > { %v926_v20 = vmul.f32 %v2120_v40, %v871_v15  ;;  %v874_v21 = vadd.f32 %v2118_v38, %v873_v19  ;;  %1656 = vmatmul.mubr.msk.bf16.gmra.mrb[20].mxu0 %vm541_vm0, %v953_v9  ;;  %vm909_vm11 = vcmp.gt.f32.partialorder %v871_v15, 0.0 }
 0x20a   : > { %vm912_vm12 = vcmp.gt.f32.partialorder %v882_v18, 0.0  ;;  %v929_v22 = vmul.f32 %v2120_v40, %v882_v18  ;;  %v944_v26 = vsel %vm911_vm10, %v879_v13, %v928_v17 }
 0x20b   : > { %vm910_vm13 = vcmp.gt.f32.partialorder %v874_v21, 0.0  ;;  %v927_v23 = vmul.f32 %v2120_v40, %v874_v21  ;;  %v942_v28 = vsel %vm909_vm11, %v871_v15, %v926_v20 }
 0x20c   : > { %v945_v27 = vsel %vm912_vm12, %v882_v18, %v929_v22 }
 0x20d   : > { %v955_v29 = vpack.c.bf16 %v945_v27, %v944_v26  ;;  %v943_v30 = vsel %vm910_vm13, %v874_v21, %v927_v23  ;;  %v1637_v31 = vpop.f32.mrb[12].mxu1 }
 0x20e   : > { %v954_v32 = vpack.c.bf16 %v943_v30, %v942_v28  ;;  %v895_v33 = vadd.f32 %v1637_v31, %v2118_v38  ;;  %v886_v34 = vpop.f32.mrb[13].mxu1 }
 0x20f   : > { %v887_v35 = vadd.f32 %v2118_v38, %v886_v34  ;;  %v1638_v24 = vpop.f32.mrb[14].mxu1 }
 0x210   : > { %v932_v25 = vmul.f32 %v2120_v40, %v895_v33  ;;  %v898_v36 = vadd.f32 %v1638_v24, %v2118_v38  ;;  %v889_v37 = vpop.f32.mrb[15].mxu1  ;;  %1659 = vmatprep.mubr.msk.bf16.mxu0 %vm541_vm0, %v954_v32  ;;  %vm915_vm14 = vcmp.gt.f32.partialorder %v895_v33, 0.0 }
 0x211   : > { %v930_v39 = vmul.f32 %v2120_v40, %v887_v35  ;;  %v890_v41 = vadd.f32 %v2118_v38, %v889_v37  ;;  %1660 = vmatmul.mubr.msk.bf16.gmra.mrb[24].mxu0 %vm541_vm0, %v955_v29  ;;  %vm913_vm15 = vcmp.gt.f32.partialorder %v887_v35, 0.0  ;;  %v2165_v38 = vld [vmem:[%s2304_s8] ss:$0 sm:$0xff] }
 0x212   : > { %vm916_vm1 = vcmp.gt.f32.partialorder %v898_v36, 0.0  ;;  %v933_v42 = vmul.f32 %v2120_v40, %v898_v36  ;;  %v948_v44 = vsel %vm915_vm14, %v895_v33, %v932_v25 }
 0x213   : > { %vm914_vm2 = vcmp.gt.f32.partialorder %v890_v41, 0.0  ;;  %v931_v43 = vmul.f32 %v2120_v40, %v890_v41  ;;  %v946_v46 = vsel %vm913_vm15, %v887_v35, %v930_v39 }
 0x214   : > { %v949_v45 = vsel %vm916_vm1, %v898_v36, %v933_v42 }
 0x215   : > { %v957_v47 = vpack.c.bf16 %v949_v45, %v948_v44  ;;  %v947_v48 = vsel %vm914_vm2, %v890_v41, %v931_v43 }
 0x216   : > { %v956_v49 = vpack.c.bf16 %v947_v48, %v946_v46 }
 0x218   : > { %1663 = vmatprep.mubr.msk.bf16.mxu0 %vm541_vm0, %v956_v49 }
 0x219   : > { %1664 = vmatmul.mubr.msk.bf16.gmra.mrb[28].mxu0 %vm541_vm0, %v957_v47 }
 0x2d4   : > { %v1653_v50 = vpop.f32.mrb[16].mxu0 }
 0x2d5   : > { %v1080_v40 = vadd.f32 %v1653_v50, %v2165_v38  ;;  %v1071_v52 = vpop.f32.mrb[17].mxu0 }
 0x2d6   : > { %v1072_v53 = vadd.f32 %v2165_v38, %v1071_v52  ;;  %v1654_v54 = vpop.f32.mrb[18].mxu0 }
 0x2d7   : > { %v1153_v55 = vmul.f32 %v2167_v51, %v1080_v40  ;;  %v1083_v56 = vadd.f32 %v1654_v54, %v2165_v38  ;;  %v1074_v57 = vpop.f32.mrb[19].mxu0  ;;  %vm1136_vm0 = vcmp.gt.f32.partialorder %v1080_v40, 0.0 }
 0x2d8   : > { %v1151_v58 = vmul.f32 %v2167_v51, %v1072_v53  ;;  %v1075_v59 = vadd.f32 %v2165_v38, %v1074_v57  ;;  %vm1134_vm3 = vcmp.gt.f32.partialorder %v1072_v53, 0.0 }
 0x2d9   : > { %vm1137_vm4 = vcmp.gt.f32.partialorder %v1083_v56, 0.0  ;;  %v1154_v60 = vmul.f32 %v2167_v51, %v1083_v56  ;;  %v1169_v62 = vsel %vm1136_vm0, %v1080_v40, %v1153_v55 }
 0x2da   : > { %vm1135_vm5 = vcmp.gt.f32.partialorder %v1075_v59, 0.0  ;;  %v1152_v61 = vmul.f32 %v2167_v51, %v1075_v59  ;;  %v1167_v0 = vsel %vm1134_vm3, %v1072_v53, %v1151_v58 }
 0x2db   : > { %v1170_v63 = vsel %vm1137_vm4, %v1083_v56, %v1154_v60 }
 0x2dc   : > { %v1184_v1 = vpack.c.bf16 %v1170_v63, %v1169_v62  ;;  %v1168_v2 = vsel %vm1135_vm5, %v1075_v59, %v1152_v61  ;;  %v1657_v3 = vpop.f32.mrb[20].mxu0 }
 0x2dd   : > { %v1183_v4 = vpack.c.bf16 %v1168_v2, %v1167_v0  ;;  %v1096_v5 = vadd.f32 %v1657_v3, %v2165_v38  ;;  %v1087_v6 = vpop.f32.mrb[21].mxu0 }
 0x2de   : > { %v1088_v7 = vadd.f32 %v2165_v38, %v1087_v6  ;;  %v1658_v8 = vpop.f32.mrb[22].mxu0 }
 0x2df   : > { %v1157_v9 = vmul.f32 %v2167_v51, %v1096_v5  ;;  %v1099_v10 = vadd.f32 %v1658_v8, %v2165_v38  ;;  %v1090_v11 = vpop.f32.mrb[23].mxu0  ;;  %1671 = vmatprep.mubr.msk.bf16.mxu1 %vm1214_vm6, %v1183_v4  ;;  %vm1140_vm7 = vcmp.gt.f32.partialorder %v1096_v5, 0.0 }
 0x2e0   : > { %v1155_v12 = vmul.f32 %v2167_v51, %v1088_v7  ;;  %v1091_v13 = vadd.f32 %v2165_v38, %v1090_v11  ;;  %1672 = vmatmul.mubr.msk.bf16.vlgmr.msra.gmra.mrb[16].mxu1 %vm1214_vm6, %v1184_v1  ;;  %vm1138_vm8 = vcmp.gt.f32.partialorder %v1088_v7, 0.0 }
 0x2e1   : > { %vm1141_vm9 = vcmp.gt.f32.partialorder %v1099_v10, 0.0  ;;  %v1158_v14 = vmul.f32 %v2167_v51, %v1099_v10  ;;  %v1173_v16 = vsel %vm1140_vm7, %v1096_v5, %v1157_v9 }
 0x2e2   : > { %vm1139_vm10 = vcmp.gt.f32.partialorder %v1091_v13, 0.0  ;;  %v1156_v15 = vmul.f32 %v2167_v51, %v1091_v13  ;;  %v1171_v18 = vsel %vm1138_vm8, %v1088_v7, %v1155_v12 }
 0x2e3   : > { %v1174_v17 = vsel %vm1141_vm9, %v1099_v10, %v1158_v14 }
 0x2e4   : > { %v1186_v19 = vpack.c.bf16 %v1174_v17, %v1173_v16  ;;  %v1172_v20 = vsel %vm1139_vm10, %v1091_v13, %v1156_v15  ;;  %v1661_v21 = vpop.f32.mrb[24].mxu0 }
 0x2e5   : > { %v1185_v22 = vpack.c.bf16 %v1172_v20, %v1171_v18  ;;  %v1112_v23 = vadd.f32 %v1661_v21, %v2165_v38  ;;  %v1103_v26 = vpop.f32.mrb[25].mxu0 }
 0x2e6   : > { %v1104_v27 = vadd.f32 %v2165_v38, %v1103_v26  ;;  %v1662_v28 = vpop.f32.mrb[26].mxu0 }
 0x2e7   : > { %v1161_v29 = vmul.f32 %v2167_v51, %v1112_v23  ;;  %v1115_v30 = vadd.f32 %v1662_v28, %v2165_v38  ;;  %v1106_v31 = vpop.f32.mrb[27].mxu0  ;;  %1675 = vmatprep.mubr.msk.bf16.mxu1 %vm1214_vm6, %v1185_v22  ;;  %vm1144_vm11 = vcmp.gt.f32.partialorder %v1112_v23, 0.0 }
 0x2e8   : > { %v1159_v32 = vmul.f32 %v2167_v51, %v1104_v27  ;;  %v1107_v33 = vadd.f32 %v2165_v38, %v1106_v31  ;;  %1676 = vmatmul.mubr.msk.bf16.gmra.mrb[20].mxu1 %vm1214_vm6, %v1186_v19  ;;  %vm1142_vm12 = vcmp.gt.f32.partialorder %v1104_v27, 0.0 }
 0x2e9   : > { %vm1145_vm13 = vcmp.gt.f32.partialorder %v1115_v30, 0.0  ;;  %v1162_v34 = vmul.f32 %v2167_v51, %v1115_v30  ;;  %v1177_v24 = vsel %vm1144_vm11, %v1112_v23, %v1161_v29 }
 0x2ea   : > { %vm1143_vm14 = vcmp.gt.f32.partialorder %v1107_v33, 0.0  ;;  %v1160_v35 = vmul.f32 %v2167_v51, %v1107_v33  ;;  %v1175_v36 = vsel %vm1142_vm12, %v1104_v27, %v1159_v32 }
 0x2eb   : > { %v1178_v25 = vsel %vm1145_vm13, %v1115_v30, %v1162_v34 }
 0x2ec   : > { %v1188_v37 = vpack.c.bf16 %v1178_v25, %v1177_v24  ;;  %v1176_v39 = vsel %vm1143_vm14, %v1107_v33, %v1160_v35  ;;  %v1665_v41 = vpop.f32.mrb[28].mxu0 }
 0x2ed   : > { %v1187_v42 = vpack.c.bf16 %v1176_v39, %v1175_v36  ;;  %v1128_v43 = vadd.f32 %v1665_v41, %v2165_v38  ;;  %v1119_v44 = vpop.f32.mrb[29].mxu0 }
 0x2ee   : > { %v1120_v45 = vadd.f32 %v2165_v38, %v1119_v44  ;;  %v1666_v46 = vpop.f32.mrb[30].mxu0 }
 0x2ef   : > { %v1165_v47 = vmul.f32 %v2167_v51, %v1128_v43  ;;  %v1131_v48 = vadd.f32 %v1666_v46, %v2165_v38  ;;  %v1122_v49 = vpop.f32.mrb[31].mxu0  ;;  %1679 = vmatprep.mubr.msk.bf16.mxu1 %vm1214_vm6, %v1187_v42  ;;  %vm1148_vm15 = vcmp.gt.f32.partialorder %v1128_v43, 0.0 }
 0x2f0   : > { %v1163_v50 = vmul.f32 %v2167_v51, %v1120_v45  ;;  %v1123_v40 = vadd.f32 %v2165_v38, %v1122_v49  ;;  %1680 = vmatmul.mubr.msk.bf16.gmra.mrb[24].mxu1 %vm1214_vm6, %v1188_v37  ;;  %vm1146_vm1 = vcmp.gt.f32.partialorder %v1120_v45, 0.0  ;;  %v1510_v38 = vld [vmem:[%s2306_s10] ss:$0 sm:$0xff] }
 0x2f1   : > { %vm1149_vm2 = vcmp.gt.f32.partialorder %v1131_v48, 0.0  ;;  %v1166_v52 = vmul.f32 %v2167_v51, %v1131_v48  ;;  %v1181_v54 = vsel %vm1148_vm15, %v1128_v43, %v1165_v47 }
 0x2f2   : > { %vm1147_vm0 = vcmp.gt.f32.partialorder %v1123_v40, 0.0  ;;  %v1164_v53 = vmul.f32 %v2167_v51, %v1123_v40  ;;  %v1179_v56 = vsel %vm1146_vm1, %v1120_v45, %v1163_v50 }
 0x2f3   : > { %v1182_v55 = vsel %vm1149_vm2, %v1131_v48, %v1166_v52 }
 0x2f4   : > { %v1190_v57 = vpack.c.bf16 %v1182_v55, %v1181_v54  ;;  %v1180_v58 = vsel %vm1147_vm0, %v1123_v40, %v1164_v53 }
 0x2f5   : > { %v1189_v59 = vpack.c.bf16 %v1180_v58, %v1179_v56 }
 0x2f7   : > { %1683 = vmatprep.mubr.msk.bf16.mxu1 %vm1214_vm6, %v1189_v59 }
 0x2f8   : > { %1684 = vmatmul.mubr.msk.bf16.gmra.mrb[28].mxu1 %vm1214_vm6, %v1190_v57 }
 0x3b3   : > { %v1673_v60 = vpop.f32.mrb[16].mxu1 }
 0x3b4   : > { %v1282_v61 = vadd.f32 %v1673_v60, %v1510_v38  ;;  %v1273_v51 = vpop.f32.mrb[17].mxu1 }
 0x3b5   : > { %v1274_v62 = vadd.f32 %v1510_v38, %v1273_v51  ;;  %v1674_v63 = vpop.f32.mrb[18].mxu1 }
 0x3b6   : > { %1338 = vst [vmem:[%s2215_s12 + $0x10] sm:$0xff] %v1282_v61  ;;  %v1285_v0 = vadd.f32 %v1674_v63, %v1510_v38  ;;  %v1276_v1 = vpop.f32.mrb[19].mxu1 }
 0x3b7   : > { %1336 = vst [vmem:[%s2215_s12] sm:$0xff] %v1274_v62  ;;  %v1277_v2 = vadd.f32 %v1510_v38, %v1276_v1 }
 0x3b8   : > { %1339 = vst [vmem:[%s2215_s12 + $0x18] sm:$0xff] %v1285_v0 }
 0x3b9   : > { %1337 = vst [vmem:[%s2215_s12 + $0x8] sm:$0xff] %v1277_v2 }
 0x3bb   : > { %v1677_v3 = vpop.f32.mrb[20].mxu1 }
 0x3bc   : > { %v1298_v4 = vadd.f32 %v1677_v3, %v1510_v38  ;;  %v1289_v5 = vpop.f32.mrb[21].mxu1 }
 0x3bd   : > { %v1290_v6 = vadd.f32 %v1510_v38, %v1289_v5  ;;  %v1678_v7 = vpop.f32.mrb[22].mxu1 }
 0x3be   : > { %1342 = vst [vmem:[%s2215_s12 + $0x30] sm:$0xff] %v1298_v4  ;;  %v1301_v8 = vadd.f32 %v1678_v7, %v1510_v38  ;;  %v1292_v9 = vpop.f32.mrb[23].mxu1 }
 0x3bf   : > { %1340 = vst [vmem:[%s2215_s12 + $0x20] sm:$0xff] %v1290_v6  ;;  %v1293_v10 = vadd.f32 %v1510_v38, %v1292_v9 }
 0x3c0   : > { %1343 = vst [vmem:[%s2215_s12 + $0x38] sm:$0xff] %v1301_v8 }
 0x3c1   : > { %1341 = vst [vmem:[%s2215_s12 + $0x28] sm:$0xff] %v1293_v10 }
 0x3c3   : > { %v1681_v11 = vpop.f32.mrb[24].mxu1 }
 0x3c4   : > { %v1314_v12 = vadd.f32 %v1681_v11, %v1510_v38  ;;  %v1305_v13 = vpop.f32.mrb[25].mxu1 }
 0x3c5   : > { %v1306_v14 = vadd.f32 %v1510_v38, %v1305_v13  ;;  %v1682_v15 = vpop.f32.mrb[26].mxu1 }
 0x3c6   : > { %1346 = vst [vmem:[%s2215_s12 + $0x50] sm:$0xff] %v1314_v12  ;;  %v1317_v16 = vadd.f32 %v1682_v15, %v1510_v38  ;;  %v1308_v17 = vpop.f32.mrb[27].mxu1 }
 0x3c7   : > { %1344 = vst [vmem:[%s2215_s12 + $0x40] sm:$0xff] %v1306_v14  ;;  %v1309_v18 = vadd.f32 %v1510_v38, %v1308_v17 }
 0x3c8   : > { %1347 = vst [vmem:[%s2215_s12 + $0x58] sm:$0xff] %v1317_v16 }
 0x3c9   : > { %1345 = vst [vmem:[%s2215_s12 + $0x48] sm:$0xff] %v1309_v18 }
 0x3cb   : > { %v1685_v19 = vpop.f32.mrb[28].mxu1  ;;  %1359 = sbr.rel (!%p1951_p5) target bundleno = 1006 (0x3ee), region = 72 }
 0x3cc   : > { %v1330_v20 = vadd.f32 %v1685_v19, %v1510_v38  ;;  %v1321_v21 = vpop.f32.mrb[29].mxu1 }
 0x3cd   : > { %v1322_v22 = vadd.f32 %v1510_v38, %v1321_v21  ;;  %v1686_v23 = vpop.f32.mrb[30].mxu1 }
 0x3ce   : > { %1350 = vst [vmem:[%s2215_s12 + $0x70] sm:$0xff] %v1330_v20  ;;  %v1333_v26 = vadd.f32 %v1686_v23, %v1510_v38  ;;  %v1324_v27 = vpop.f32.mrb[31].mxu1 }
 0x3cf   : > { %1348 = vst [vmem:[%s2215_s12 + $0x60] sm:$0xff] %v1322_v22  ;;  %v1325_v28 = vadd.f32 %v1510_v38, %v1324_v27 }
 0x3d0   : > { %1351 = vst [vmem:[%s2215_s12 + $0x78] sm:$0xff] %v1333_v26 }
 0x3d1   : > { %1349 = vst [vmem:[%s2215_s12 + $0x68] sm:$0xff] %v1325_v28 }
 0x3d2   : > { %s2320_s14 = smov (!%p1362_p9, %s1361_s14), 16 }
 0x3d3   : > { %s2240_s22 = sshll.u32 %s2320_s14, 7 }
 0x3d4   : > { %s1366_s0 = ssub.s32 2048, %s2240_s22 }
 0x3d5   : > { %1367 = vsyncadd %s2235_s13, %s1366_s0  ;;  %p1524_p11 = scmp.ne.s32.totalorder %s2240_s22, 0  ;;  %s1530_s26 = sshll.u32 %s1934_s21, 11 }
 0x3d6   : > { %s2249_s16 = scalar_lea.hbm %s2307_s11, %s1530_s26  ;;  %s1372_s24 = sshll.u32 %s2215_s12, 4  ;;  %s2252_s24 = int_to_ptr.vmem [resolvable:$true] %s1372_s24 }
 0x3d7   : > { %s1781_s25 = scalar_lea.vmem %s2252_s24, %s2240_s22  ;;  %s1850_s30 = smov [#allocation5]  }
 0x3d8   : > { %p1782_p5 = scmp.ne.s32.totalorder %s2252_s24, %s1781_s25  ;;  %s1785_s29 = sshll.u32 %s1850_s30, 4  ;;  %s1786_s29 = int_to_ptr.vmem [resolvable:$false] %s1785_s29 }
 0x3d9   : > { %s1787_s21 = scalar_lea.vmem %s1786_s29, 4096  ;;  %p1788_p0 = scmp.lt.s32.totalorder %s2252_s24, %s1786_s29 }
 0x3da   : > { %p1783_p12 = pnand %p1782_p5, %p1524_p11  ;;  %p1789_p1 = scmp.lt.s32.totalorder %s1787_s21, %s1781_s25 }
 0x3dc   : > { %p1784_p13 = pneg %p1783_p12  ;;  %p1790_p2 = por %p1789_p1, %p1788_p0 }
 0x3de   : > { %p1791_p3 = pnand %p1790_p2, %p1784_p13 }
 0x3e0   : > { %1794 = shalt.err (!%p1791_p3)
}
 0x3e1   : > { %s1795_s12 = scalar_lea.hbm %s2249_s16, %s2240_s22  ;;  %s1799_s26 = scalar_lea.hbm %s2307_s11, 6400 }
 0x3e2   : > { %p1796_p4 = scmp.ne.s32.totalorder %s2249_s16, %s1795_s12  ;;  %p1800_p10 = scmp.lt.u32.totalorder %s2249_s16, %s2307_s11 }
 0x3e3   : > { %p1801_p9 = scmp.lt.u32.totalorder %s1799_s26, %s1795_s12  ;;  %p1803_p12 = scmp.lt.u32.totalorder %s1795_s12, %s2249_s16 }
 0x3e4   : > { %p1797_p7 = pnand %p1796_p4, %p1524_p11 }
 0x3e5   : > { %p1802_p5 = por %p1801_p9, %p1800_p10 }
 0x3e6   : > { %p1798_p8 = pneg %p1797_p7 }
 0x3e7   : > { %p1804_p13 = por %p1803_p12, %p1802_p5 }
 0x3e9   : > { %p1805_p0 = pnand %p1804_p13, %p1798_p8 }
 0x3eb   : > { %1808 = shalt.err (!%p1805_p0)
}
 0x3ec   : > { %s1851_s25 = smov 128   ;;  %s1852_s30 = smov 8  }
 0x3ed   : > { %1378 = dma.vmem_to_hbm [thread:$0]  (%p1524_p11), %s2252_s24, %s2240_s22, %s2249_s16, %s2235_s13, %s1851_s25, %s1851_s25, %s1852_s30  }
 0x3ee PF: > { %p1702_p1 = scmp.ge.s32.totalorder %s1847_s20, 2  ;;  %s1387_s29 = sand.u32 1, %s1835_s17  }
 0x3ef   : > { %s1388_s21 = scalar_lea.sflag [#allocation3], %s1387_s29 }
 0x3f0   : > { %p1697_p2 = pnand %p1702_p1, %p1955_p6 }
 0x3f2   : > { %1830 = dma.done.wait (!%p1697_p2), %s1388_s21, 2048  }
 0x3f3   : > { %1832 = vsyncadd (!%p1697_p2), %s1388_s21, 4294965248  ;;  %s2314_s12 = sld [smem:[#allocation8_spill]]  ;;  %p22_p3 = scmp.ge.s32.totalorder %s1938_s23, 6  }
 0x3f4   : > { %s2315_s17 = smov %s1839_s18  ;;  %s2316_s18 = smov %s1843_s19 }
 0x3f5   : > { %s2318_s20 = smov %s1938_s23  ;;  %24 = sbr.rel (!%p22_p3) target bundleno = 6 (0x6), region = 104 }
 0x3f9   : > { %s2317_s19 = smov %s2314_s12 }
 0x3fc   :  { %1393 = vsyncpa [#allocation3], 1 }
 0x3fd   :  { %1395 = vsyncpa [#allocation3 + $0x1], 1 }
 0x3fe   :  { %1396 = vsyncpa [#allocation4], 1 }
 0x3ff   :  { %1398 = vsyncpa [#allocation4 + $0x1], 1 }

</bundles_post_ra>
